<compile_context>
chip_gen: v7x
topology: tpu7x:2x2x1
jax: 0.10.0
libtpu: 0.0.40
codegen_flags: <defaults>
</compile_context>

<pallas_src>
import functools

import jax
import jax.numpy as jnp
from jax.experimental import pallas as pl
from jax.experimental.pallas import tpu as pltpu


def _round_up(x, m):
    return ((x + m - 1) // m) * m


def _rbf_mmd_kernel(z_ref, out_ref, acc_ref, rn_ref, cn_ref, *, bs, bt, gamma, inv_m2):
    # z_ref : (Np, TILE_D) f32 feature slab for the current d-tile (all rows).
    # out_ref: (1, 1, Np) f32 partial, one lane-dense row per row block.
    # acc_ref: (TR, Np) f32 Gram-row-block accumulator.
    # rn_ref : (TR, 1)  f32 accumulated squared norms of this block's rows.
    # cn_ref : (1, Np)  f32 accumulated squared norms of all rows (lane-major).
    i = pl.program_id(0)          # row block (parallel)
    k = pl.program_id(1)          # feature tile (reduction, arbitrary)
    nk = pl.num_programs(1)

    tile_rows = acc_ref.shape[0]
    n_pad = acc_ref.shape[1]
    tile_d = z_ref.shape[1]
    row_start = pl.multiple_of(i * tile_rows, tile_rows)

    @pl.when(k == 0)
    def _init():
        acc_ref[...] = jnp.zeros_like(acc_ref)
        rn_ref[...] = jnp.zeros_like(rn_ref)
        cn_ref[...] = jnp.zeros_like(cn_ref)

    zk = z_ref[...]                                        # (Np, TILE_D)
    zrows = z_ref[pl.ds(row_start, tile_rows), :]          # (TR, TILE_D)

    # Gram row block: contract last dim vs last dim -> no (D, Np) transpose.
    acc_ref[...] += jax.lax.dot_general(
        zrows, zk,
        dimension_numbers=(((1,), (1,)), ((), ())),
        preferred_element_type=jnp.float32)

    # Squared-norm accumulators (no separate full pass over z, no diag extract).
    zsq = zk * zk
    ones_row = jnp.ones((1, tile_d), jnp.float32)
    cn_ref[...] += jax.lax.dot_general(                    # (1, Np) lane-major, on MXU
        ones_row, zsq,
        dimension_numbers=(((1,), (1,)), ((), ())),
        preferred_element_type=jnp.float32)
    rn_ref[...] += jnp.sum(zrows * zrows, axis=1, keepdims=True)   # (TR, 1)

    @pl.when(k == nk - 1)
    def _finalize():
        zzt = acc_ref[...]                                 # (TR, Np)
        # Clamp tiny negative fp-cancellation residue on the diagonal.
        expo = jnp.maximum(rn_ref[...] - 2.0 * zzt + cn_ref[...], 0.0)
        kmat = jnp.exp(-gamma * expo)                      # EUP

        # Signed membership: +1 source rows, -1 target rows, 0 padded rows.
        # s^T K s == sum(Kxx) + sum(Kyy) - 2*sum(Kxy); padded rows/cols contribute 0.
        row_ids = jax.lax.broadcasted_iota(jnp.int32, (tile_rows, 1), 0) + row_start
        col_ids = jax.lax.broadcasted_iota(jnp.int32, (1, n_pad), 1)
        s_row = jnp.where(row_ids < bs, 1.0,
                          jnp.where(row_ids < bs + bt, -1.0, 0.0)).astype(jnp.float32)
        s_col = jnp.where(col_ids < bs, 1.0,
                          jnp.where(col_ids < bs + bt, -1.0, 0.0)).astype(jnp.float32)

        colsum = jnp.sum(kmat * s_row, axis=0, keepdims=True)      # (1, Np)
        out_ref[0] = (colsum * s_col) * inv_m2                     # lane-dense row


def rbf_mmd_loss(source_features, target_features, sigma=1.0):
    bs = source_features.shape[0]
    bt = target_features.shape[0]
    x1 = source_features.reshape(bs, -1).astype(jnp.float32)
    x2 = target_features.reshape(bt, -1).astype(jnp.float32)
    z = jnp.concatenate([x1, x2], axis=0)                          # (N, D)
    n, d = z.shape

    # --- tiling / padding ---------------------------------------------------
    n_pad = _round_up(n, 128)                  # lane-dense Gram columns
    tile_rows = min(256, n_pad)                # row block of the Gram matrix
    n_pad = _round_up(n_pad, tile_rows)
    n_rb = n_pad // tile_rows

    d_pad = _round_up(d, 128)
    # Cap the feature tile so the double-buffered (Np, TILE_D) slab stays ~<=8 MiB.
    cap = max(128, ((8 * 1024 * 1024) // (8 * n_pad)) // 128 * 128)
    tile_d = 128
    for cand in (512, 256, 128):
        if cand <= cap and d_pad % cand == 0:
            tile_d = cand
            break
    n_dt = d_pad // tile_d

    if (n_pad, d_pad) != (n, d):
        z = jnp.pad(z, ((0, n_pad - n), (0, d_pad - d)))           # zeros: inert

    # --- compile-time constants ----------------------------------------------
    gamma = 1.0 / (2.0 * float(sigma) ** 2)
    inv_m2 = 1.0 / float(bs * bs)              # reference divides all terms by bs*bs
    kernel = functools.partial(_rbf_mmd_kernel, bs=bs, bt=bt, gamma=gamma, inv_m2=inv_m2)

    # --- VMEM budget (double-buffered z slab + accumulators + out block) -----
    vmem_bytes = 4 * (2 * n_pad * tile_d        # z feature slabs (2 buffers)
                      + tile_rows * n_pad       # Gram accumulator
                      + tile_rows * 128         # row-norm scratch (lane padded)
                      + 8 * n_pad               # col-norm scratch (sublane padded)
                      + 2 * 8 * n_pad)          # output block (2 buffers, padded)
    vmem_limit = min(120 * 1024 * 1024, 2 * vmem_bytes + (4 << 20))

    cost = pl.CostEstimate(
        flops=2 * n_pad * n_pad * d_pad + 4 * n_pad * d_pad * n_rb,
        transcendentals=n_pad * n_pad,
        bytes_accessed=4 * (n_rb * n_pad * d_pad + n_rb * n_pad),
    )

    grid_spec = pltpu.PrefetchScalarGridSpec(
        num_scalar_prefetch=0,
        grid=(n_rb, n_dt),
        in_specs=[pl.BlockSpec((n_pad, tile_d), lambda i, k: (0, k))],
        out_specs=pl.BlockSpec((1, 1, n_pad), lambda i, k: (i, 0, 0)),
        scratch_shapes=[
            pltpu.VMEM((tile_rows, n_pad), jnp.float32),   # acc
            pltpu.VMEM((tile_rows, 1), jnp.float32),       # row norms
            pltpu.VMEM((1, n_pad), jnp.float32),           # col norms
        ],
    )

    # NOTE: for very large N (acc tile_rows*N no longer fitting v7x's 64 MiB VMEM),
    # a third grid axis blocking the Gram columns would be the next step.
    partial = pl.pallas_call(
        kernel,
        out_shape=jax.ShapeDtypeStruct((n_rb, 1, n_pad), jnp.float32),
        grid_spec=grid_spec,
        compiler_params=pltpu.CompilerParams(
            dimension_semantics=("parallel", "arbitrary"),
            vmem_limit_bytes=int(vmem_limit),
        ),
        cost_estimate=cost,
    )(z)
    return jnp.sum(partial)


def _reference_mmd(source_features, target_features, sigma=1.0):
    bs = source_features.shape[0]
    bt = target_features.shape[0]
    x1 = source_features.reshape(bs, -1).astype(jnp.float32)
    x2 = target_features.reshape(bt, -1).astype(jnp.float32)
    z = jnp.concatenate([x1, x2], axis=0)
    zzt = z @ z.T
    nrm = jnp.diag(zzt)[:, None]
    k = jnp.exp(-(1.0 / (2.0 * sigma ** 2)) * (nrm - 2.0 * zzt + nrm.T))
    k_xx = k[:bs, :bs]
    k_xy = k[:bs, bs:]
    k_yy = k[bs:, bs:]
    m = bs
    return (jnp.sum(k_xx) + jnp.sum(k_yy) - 2.0 * jnp.sum(k_xy)) / (m * m)


if __name__ == "__main__":
    key = jax.random.PRNGKey(0)
    k1, k2 = jax.random.split(key)
    # NCHW feature maps, flattened inside the loss (matches the PyTorch module).
    source = jax.random.normal(k1, (2, 4, 16, 16), dtype=jnp.float32)
    target = jax.random.normal(k2, (2, 4, 16, 16), dtype=jnp.float32) + 0.5

    mmd = rbf_mmd_loss(source, target, sigma=1.0)
    mmd = jax.block_until_ready(mmd)

    ref = _reference_mmd(source, target, sigma=1.0)
    assert jnp.allclose(mmd, ref, rtol=1e-4, atol=1e-5), (mmd, ref)
    print("KERNEL_OK")
</pallas_src>

<mosaic_0001>
module attributes {stable_mosaic.version = 11 : i64} {
  func.func @_rbf_mmd_kernel(%arg0: i32, %arg1: i32, %arg2: memref<128x512xf32, #tpu.memory_space<vmem>>, %arg3: memref<1x1x128xf32, #tpu.memory_space<vmem>>, %arg4: memref<128x128xf32, #tpu.memory_space<vmem>>, %arg5: memref<128x1xf32, #tpu.memory_space<vmem>>, %arg6: memref<1x128xf32, #tpu.memory_space<vmem>>) attributes {dimension_semantics = [#tpu.dimension_semantics<parallel>, #tpu.dimension_semantics<arbitrary>], iteration_bounds = array<i64: 1, 2>, scalar_prefetch = 0 : i64, scratch_operands = 3 : i64, tpu.core_type = #tpu.core_type<tc>, window_params = [{transform_indices = @transform_0, window_bounds = array<i64: 128, 512>}, {transform_indices = @transform_1, window_bounds = array<i64: 1, 1, 128>}]} {
    %c128_i32 = arith.constant 128 : i32
    %0 = arith.muli %arg0, %c128_i32 : i32
    %1 = tpu.assume_multiple %0, 128 : i32
    %c0_i32 = arith.constant 0 : i32
    %2 = arith.cmpi eq, %arg1, %c0_i32 : i32
    %3 = arith.extui %2 : i1 to i32
    %c0_i32_0 = arith.constant 0 : i32
    %4 = arith.cmpi ne, %3, %c0_i32_0 : i32
    scf.if %4 {
      %cst_19 = arith.constant 0.000000e+00 : f32
      %27 = vector.broadcast %cst_19 : f32 to vector<128x128xf32>
      %c0_20 = arith.constant 0 : index
      %c0_21 = arith.constant 0 : index
      %28 = vector.load %arg4[%c0_20, %c0_21] : memref<128x128xf32, #tpu.memory_space<vmem>>, vector<128x128xf32>
      tpu.vector_store %arg4[%c0_20, %c0_21], %27 {strides = array<i32>} : memref<128x128xf32, #tpu.memory_space<vmem>>, vector<128x128xf32>,
      %cst_22 = arith.constant 0.000000e+00 : f32
      %29 = vector.broadcast %cst_22 : f32 to vector<128x1xf32>
      %c0_23 = arith.constant 0 : index
      %c0_24 = arith.constant 0 : index
      %30 = vector.load %arg5[%c0_23, %c0_24] : memref<128x1xf32, #tpu.memory_space<vmem>>, vector<128x1xf32>
      tpu.vector_store %arg5[%c0_23, %c0_24], %29 {strides = array<i32>} : memref<128x1xf32, #tpu.memory_space<vmem>>, vector<128x1xf32>,
      %cst_25 = arith.constant 0.000000e+00 : f32
      %31 = vector.broadcast %cst_25 : f32 to vector<1x128xf32>
      %c0_26 = arith.constant 0 : index
      %c0_27 = arith.constant 0 : index
      %32 = vector.load %arg6[%c0_26, %c0_27] : memref<1x128xf32, #tpu.memory_space<vmem>>, vector<1x128xf32>
      tpu.vector_store %arg6[%c0_26, %c0_27], %31 {strides = array<i32>} : memref<1x128xf32, #tpu.memory_space<vmem>>, vector<1x128xf32>,
    } else {
    }
    %c0 = arith.constant 0 : index
    %c0_1 = arith.constant 0 : index
    %5 = vector.load %arg2[%c0, %c0_1] : memref<128x512xf32, #tpu.memory_space<vmem>>, vector<128x512xf32>
    %6 = arith.index_cast %1 : i32 to index
    %c0_2 = arith.constant 0 : index
    %7 = vector.load %arg2[%6, %c0_2] : memref<128x512xf32, #tpu.memory_space<vmem>>, vector<128x512xf32>
    %c0_3 = arith.constant 0 : index
    %c0_4 = arith.constant 0 : index
    %8 = vector.load %arg4[%c0_3, %c0_4] : memref<128x128xf32, #tpu.memory_space<vmem>>, vector<128x128xf32>
    %cst = arith.constant dense<0.000000e+00> : vector<128x128xf32>
    %9 = tpu.matmul %7, %5, %cst {dimension_numbers = #tpu.dot_dimension_numbers<[1], [1], [0], [0], [0, 0, 1, 0], [], []>} : vector<128x512xf32>, vector<128x512xf32>, vector<128x128xf32> -> vector<128x128xf32>
    %10 = arith.addf %8, %9 : vector<128x128xf32>
    %c0_5 = arith.constant 0 : index
    %c0_6 = arith.constant 0 : index
    %11 = vector.load %arg4[%c0_5, %c0_6] : memref<128x128xf32, #tpu.memory_space<vmem>>, vector<128x128xf32>
    tpu.vector_store %arg4[%c0_5, %c0_6], %10 {strides = array<i32>} : memref<128x128xf32, #tpu.memory_space<vmem>>, vector<128x128xf32>,
    %12 = arith.mulf %5, %5 : vector<128x512xf32>
    %cst_7 = arith.constant 1.000000e+00 : f32
    %13 = vector.broadcast %cst_7 : f32 to vector<1x512xf32>
    %c0_8 = arith.constant 0 : index
    %c0_9 = arith.constant 0 : index
    %14 = vector.load %arg6[%c0_8, %c0_9] : memref<1x128xf32, #tpu.memory_space<vmem>>, vector<1x128xf32>
    %cst_10 = arith.constant dense<0.000000e+00> : vector<1x128xf32>
    %15 = tpu.matmul %13, %12, %cst_10 {dimension_numbers = #tpu.dot_dimension_numbers<[1], [1], [0], [0], [0, 0, 1, 0], [], []>} : vector<1x512xf32>, vector<128x512xf32>, vector<1x128xf32> -> vector<1x128xf32>
    %16 = arith.addf %14, %15 : vector<1x128xf32>
    %c0_11 = arith.constant 0 : index
    %c0_12 = arith.constant 0 : index
    %17 = vector.load %arg6[%c0_11, %c0_12] : memref<1x128xf32, #tpu.memory_space<vmem>>, vector<1x128xf32>
    tpu.vector_store %arg6[%c0_11, %c0_12], %16 {strides = array<i32>} : memref<1x128xf32, #tpu.memory_space<vmem>>, vector<1x128xf32>,
    %c0_13 = arith.constant 0 : index
    %c0_14 = arith.constant 0 : index
    %18 = vector.load %arg5[%c0_13, %c0_14] : memref<128x1xf32, #tpu.memory_space<vmem>>, vector<128x1xf32>
    %19 = arith.mulf %7, %7 : vector<128x512xf32>
    %cst_15 = arith.constant dense<0.000000e+00> : vector<128xf32>
    %20 = vector.multi_reduction <add>, %19, %cst_15 [1] : vector<128x512xf32> to vector<128xf32>
    %21 = vector.shape_cast %20 : vector<128xf32> to vector<128x1xf32>
    %22 = arith.addf %18, %21 : vector<128x1xf32>
    %c0_16 = arith.constant 0 : index
    %c0_17 = arith.constant 0 : index
    %23 = vector.load %arg5[%c0_16, %c0_17] : memref<128x1xf32, #tpu.memory_space<vmem>>, vector<128x1xf32>
    tpu.vector_store %arg5[%c0_16, %c0_17], %22 {strides = array<i32>} : memref<128x1xf32, #tpu.memory_space<vmem>>, vector<128x1xf32>,
    %c1_i32 = arith.constant 1 : i32
    %24 = arith.cmpi eq, %arg1, %c1_i32 : i32
    %25 = arith.extui %24 : i1 to i32
    %c0_i32_18 = arith.constant 0 : i32
    %26 = arith.cmpi ne, %25, %c0_i32_18 : i32
    scf.if %26 {
      %c0_19 = arith.constant 0 : index
      %c0_20 = arith.constant 0 : index
      %27 = vector.load %arg4[%c0_19, %c0_20] : memref<128x128xf32, #tpu.memory_space<vmem>>, vector<128x128xf32>
      %c0_21 = arith.constant 0 : index
      %c0_22 = arith.constant 0 : index
      %28 = vector.load %arg5[%c0_21, %c0_22] : memref<128x1xf32, #tpu.memory_space<vmem>>, vector<128x1xf32>
      %cst_23 = arith.constant 2.000000e+00 : f32
      %29 = vector.broadcast %cst_23 : f32 to vector<128x128xf32>
      %30 = arith.mulf %29, %27 : vector<128x128xf32>
      %31 = vector.broadcast %28 : vector<128x1xf32> to vector<128x128xf32>
      %32 = arith.subf %31, %30 : vector<128x128xf32>
      %c0_24 = arith.constant 0 : index
      %c0_25 = arith.constant 0 : index
      %33 = vector.load %arg6[%c0_24, %c0_25] : memref<1x128xf32, #tpu.memory_space<vmem>>, vector<1x128xf32>
      %34 = vector.broadcast %33 : vector<1x128xf32> to vector<128x128xf32>
      %35 = arith.addf %32, %34 : vector<128x128xf32>
      %cst_26 = arith.constant 0.000000e+00 : f32
      %36 = vector.broadcast %cst_26 : f32 to vector<128x128xf32>
      %37 = arith.maximumf %35, %36 : vector<128x128xf32>
      %cst_27 = arith.constant -5.000000e-01 : f32
      %38 = vector.broadcast %cst_27 : f32 to vector<128x128xf32>
      %39 = arith.mulf %38, %37 : vector<128x128xf32>
      %40 = math.exp %39 : vector<128x128xf32>
      %41 = tpu.iota {dimensions = array<i32: 0>} : vector<128x1xi32>
      %42 = vector.broadcast %1 : i32 to vector<128x1xi32>
      %43 = arith.addi %41, %42 : vector<128x1xi32>
      %44 = tpu.iota {dimensions = array<i32: 1>} : vector<1x128xi32>
      %c2_i32 = arith.constant 2 : i32
      %45 = vector.broadcast %c2_i32 : i32 to vector<128x1xi32>
      %46 = arith.cmpi slt, %43, %45 : vector<128x1xi32>
      %c4_i32 = arith.constant 4 : i32
      %47 = vector.broadcast %c4_i32 : i32 to vector<128x1xi32>
      %48 = arith.cmpi slt, %43, %47 : vector<128x1xi32>
      %cst_28 = arith.constant -1.000000e+00 : f32
      %cst_29 = arith.constant 0.000000e+00 : f32
      %49 = vector.broadcast %cst_28 : f32 to vector<128x1xf32>
      %50 = vector.broadcast %cst_29 : f32 to vector<128x1xf32>
      %51 = arith.select %48, %49, %50 : vector<128x1xi1>, vector<128x1xf32>
      %cst_30 = arith.constant 1.000000e+00 : f32
      %52 = vector.broadcast %cst_30 : f32 to vector<128x1xf32>
      %53 = arith.select %46, %52, %51 : vector<128x1xi1>, vector<128x1xf32>
      %c2_i32_31 = arith.constant 2 : i32
      %54 = vector.broadcast %c2_i32_31 : i32 to vector<1x128xi32>
      %55 = arith.cmpi slt, %44, %54 : vector<1x128xi32>
      %c4_i32_32 = arith.constant 4 : i32
      %56 = vector.broadcast %c4_i32_32 : i32 to vector<1x128xi32>
      %57 = arith.cmpi slt, %44, %56 : vector<1x128xi32>
      %cst_33 = arith.constant -1.000000e+00 : f32
      %cst_34 = arith.constant 0.000000e+00 : f32
      %58 = vector.broadcast %cst_33 : f32 to vector<1x128xf32>
      %59 = vector.broadcast %cst_34 : f32 to vector<1x128xf32>
      %60 = arith.select %57, %58, %59 : vector<1x128xi1>, vector<1x128xf32>
      %cst_35 = arith.constant 1.000000e+00 : f32
      %61 = vector.broadcast %cst_35 : f32 to vector<1x128xf32>
      %62 = arith.select %55, %61, %60 : vector<1x128xi1>, vector<1x128xf32>
      %63 = vector.broadcast %53 : vector<128x1xf32> to vector<128x128xf32>
      %64 = arith.mulf %40, %63 : vector<128x128xf32>
      %cst_36 = arith.constant dense<0.000000e+00> : vector<128xf32>
      %65 = vector.multi_reduction <add>, %64, %cst_36 [0] : vector<128x128xf32> to vector<128xf32>
      %66 = vector.shape_cast %65 : vector<128xf32> to vector<1x128xf32>
      %67 = arith.mulf %66, %62 : vector<1x128xf32>
      %cst_37 = arith.constant 2.500000e-01 : f32
      %68 = vector.broadcast %cst_37 : f32 to vector<1x128xf32>
      %69 = arith.mulf %67, %68 : vector<1x128xf32>
      %c0_38 = arith.constant 0 : index
      %c0_39 = arith.constant 0 : index
      %c0_40 = arith.constant 0 : index
      %70 = vector.load %arg3[%c0_38, %c0_39, %c0_40] : memref<1x1x128xf32, #tpu.memory_space<vmem>>, vector<1x1x128xf32>
      %71 = vector.shape_cast %70 : vector<1x1x128xf32> to vector<1x128xf32>
      %72 = vector.shape_cast %69 : vector<1x128xf32> to vector<1x1x128xf32>
      tpu.vector_store %arg3[%c0_38, %c0_39, %c0_40], %72 {strides = array<i32>} : memref<1x1x128xf32, #tpu.memory_space<vmem>>, vector<1x1x128xf32>,
    } else {
    }
    return
  }
  func.func @transform_0(%arg0: i32, %arg1: i32) -> (i32, i32) {
    %c0_i32 = arith.constant 0 : i32
    %c0_i32_0 = arith.constant 0 : i32
    return %c0_i32, %arg1 : i32, i32
  }
  func.func @transform_1(%arg0: i32, %arg1: i32) -> (i32, i32, i32) {
    %c0_i32 = arith.constant 0 : i32
    %c0_i32_0 = arith.constant 0 : i32
    %c0_i32_1 = arith.constant 0 : i32
    return %arg0, %c0_i32, %c0_i32_0 : i32, i32, i32
  }
}

</mosaic_0001>

<bundles_post_ra>
// kernel: tpu_custom_call.1
= control target key start
LH: loop header
LB: loop body
LE: loop exit
PB: predicated region body
PF: predicated region fallthrough
CT: control target
= control target key end

     0   :  { %6 = vsyncpa [#allocation6], 0  ;;  %s2801_s0 = inlined_call_operand.hbm [shape: f32[128,1024], index: 0, kind: input, shape index: {}]   ;;  %s2802_s1 = inlined_call_operand.hbm [shape: f32[1,1,128], index: 1, kind: output, shape index: {}]  }
   0x1   :  { %8 = vsyncpa [#allocation6 + $0x1], 0 }
   0x2   :  { %9 = vsyncpa [#allocation7], 0  ;;  %s1880_s6 = smov 0   ;;  %s1882_s7 = smov 0  }
   0x3   :  { %s1884_s8 = smov 0   ;;  %s1886_s9 = smov 0  }
   0x4   :  { %s1888_s10 = smov 0   ;;  %s1890_s11 = smov 0  }
   0x5 LB: > { %s1502_s12 = sadd.s32 4294967295, %s1859_s11   ;;  %s24_s13 = sadd.s32 1, %s1855_s10  ;;  %s1859_s11 = sphi %s1890_s11, %s15_s11   ;;  %s1855_s10 = sphi %s1888_s10, %s3001_s10   ;;  %s1851_s9 = sphi %s1886_s9, %s3000_s9   ;;  %s1847_s8 = sphi %s1884_s8, %s2999_s8   ;;  %s1843_s7 = sphi %s1882_s7, %s2998_s7   ;;  %s1839_s6 = sphi %s1880_s6, %s2997_s6  }
   0x6   : > { %p25_p0 = scmp.ge.s32.totalorder %s24_s13, 2  ;;  %s34_s14 = sadd.s32 1, %s1847_s8 }
   0x7   : > { %p41_p1 = scmp.ne.s32.totalorder %s1847_s8, %s1843_s7  ;;  %p42_p2 = scmp.eq.s32.totalorder %s1859_s11, 0 }
   0x8   : > { %s3003_s13 = smov (%p25_p0, %s24_s13), 0  ;;  %p47_p4 = scmp.ne.s32.totalorder %s1843_s7, %s1839_s6 }
   0x9   : > { %p1916_p3 = por %p42_p2, %p41_p1  ;;  %s31_s16 = ssub.s32 %s1855_s10, %s3003_s13 }
   0xa   : > { %p48_p5 = scmp.eq.s32.totalorder %s1502_s12, 0  ;;  %p32_p6 = scmp.eq.s32.totalorder %s31_s16, 0 }
   0xb   : > { %p1656_p8 = scmp.lt.s32.totalorder %s1859_s11, 2  ;;  %s97_s19 = sand.u32 1, %s1847_s8  }
   0xc   : > { %p1925_p7 = por %p48_p5, %p47_p4  ;;  %s1517_s20 = sshll.u32 %s1855_s10, 9 }
   0xd   : > { %s1931_s18 = scalar_select %p32_p6, %s1847_s8, %s34_s14  }
   0xe   : > { %s1505_s21 = sshll.u32 %s97_s19, 9  ;;  %s1938_s24 = scalar_lea.hbm %s2801_s0, %s1517_s20 }
   0xf   : > { %s101_s25 = scalar_lea.vmem [#allocation5], %s1505_s21  ;;  %p1942_p9 = pnand %p1656_p8, %p1916_p3 }
  0x10   : > { %s108_s26 = sshll.u32 %s101_s25, 4  ;;  %s1949_s28 = scalar_lea.sflag [#allocation6], %s97_s19  ;;  %s1946_s26 = int_to_ptr.vmem [resolvable:$true] %s108_s26 }
  0x11   : > { %s1749_s29 = scalar_lea.hbm %s1938_s24, 8192  ;;  %p1751_p12 = pneg %p1942_p9 }
  0x12   : > { %p1750_p11 = scmp.ne.s32.totalorder %s1938_s24, %s1749_s29  ;;  %s1754_s3 = scalar_lea.hbm %s2801_s0, 16384 }
  0x13   : > { %p1755_p1 = scmp.lt.u32.totalorder %s1938_s24, %s2801_s0  ;;  %p1756_p2 = scmp.lt.u32.totalorder %s1754_s3, %s1749_s29 }
  0x14   : > { %p1752_p13 = pnand %p1751_p12, %p1750_p11  ;;  %p1758_p4 = scmp.lt.u32.totalorder %s1749_s29, %s1938_s24 }
  0x15   : > { %p1757_p3 = por %p1756_p2, %p1755_p1 }
  0x16   : > { %p1753_p0 = pneg %p1752_p13 }
  0x17   : > { %p1759_p5 = por %p1758_p4, %p1757_p3 }
  0x19   : > { %p1760_p6 = pnand %p1759_p5, %p1753_p0 }
  0x1b   : > { %1763 = shalt.err (!%p1760_p6)
}
  0x1c   : > { %s1764_s6 = scalar_lea.vmem %s1946_s26, 8192  ;;  %s1861_s14 = smov [#allocation5]  }
  0x1d   : > { %p1765_p8 = scmp.ne.s32.totalorder %s1946_s26, %s1764_s6  ;;  %s1769_s15 = sshll.u32 %s1861_s14, 4  ;;  %s1770_s15 = int_to_ptr.vmem [resolvable:$false] %s1769_s15 }
  0x1e   : > { %s1771_s16 = scalar_lea.vmem %s1770_s15, 16384  ;;  %p1772_p10 = scmp.lt.s32.totalorder %s1946_s26, %s1770_s15 }
  0x1f   : > { %p1767_p11 = pnand %p1765_p8, %p1751_p12  ;;  %p1773_p1 = scmp.lt.s32.totalorder %s1771_s16, %s1764_s6 }
  0x21   : > { %p1768_p13 = pneg %p1767_p11  ;;  %p1774_p2 = por %p1773_p1, %p1772_p10 }
  0x23   : > { %p1775_p3 = pnand %p1774_p2, %p1768_p13 }
  0x25   : > { %1778 = shalt.err (!%p1775_p3)
}
  0x26   : > { %s1862_s19 = smov 1024   ;;  %s1863_s20 = smov 512  }
  0x27   : > { %s1864_s21 = smov 32   ;;  %p116_p12 = scmp.lt.s32.totalorder %s1859_s11, 3 }
  0x28   : > { %1655 = dma.hbm_to_vmem [thread:$0]  (!%p1942_p9), %s1938_s24, 8192, %s1946_s26, %s1949_s28, %s1862_s19, %s1863_s20, %s1864_s21  }
  0x29   : > { %p2869_p0 = scmp.ge.s32.totalorder %s1859_s11, 1 }
  0x2b   : > { %p117_p4 = pnand %p2869_p0, %p116_p12 }
  0x2d   : > { %120 = sbr.rel (%p117_p4) target bundleno = 619 (0x26b), region = 24 }
  0x34   : > { %s122_s22 = sand.u32 1, %s1843_s7  }
  0x35   : > { %s1509_s23 = sshll.u32 %s122_s22, 9  ;;  %s123_s25 = scalar_lea.sflag [#allocation6], %s122_s22 }
  0x36   : > { %s1981_s29 = scalar_lea.vmem [#allocation5], %s1509_s23 }
  0x37   : > { %1830 = dma.done.wait (%p1925_p7), %s123_s25, 8192  }
  0x38   : > { %1832 = vsyncadd (%p1925_p7), %s123_s25, 4294959104  ;;  %p1510_p10 = scmp.ne.s32.totalorder %s1851_s9, 0 }
  0x39   : > { %vm162_vm0 = vcmask (!%p1510_p10), 7168   ;;  %v1865_v0 = vmov (!%p1510_p10), 0.0  }
  0x3a   : > { %145 = sbr.rel (%p1510_p10) target bundleno = 75 (0x4b), region = 32  ;;  %146 = vst [vmem:[#allocation2] sm:$0xff] (!%p1510_p10), %v1865_v0  ;;  %147 = vst [vmem:[#allocation2 + $0x8] sm:$0xff] (!%p1510_p10), %v1865_v0 }
  0x3b   : > { %148 = vst [vmem:[#allocation2 + $0x10] sm:$0xff] (!%p1510_p10), %v1865_v0  ;;  %149 = vst [vmem:[#allocation2 + $0x18] sm:$0xff] (!%p1510_p10), %v1865_v0 }
  0x3c   : > { %150 = vst [vmem:[#allocation2 + $0x20] sm:$0xff] (!%p1510_p10), %v1865_v0  ;;  %151 = vst [vmem:[#allocation2 + $0x28] sm:$0xff] (!%p1510_p10), %v1865_v0 }
  0x3d   : > { %152 = vst [vmem:[#allocation2 + $0x30] sm:$0xff] (!%p1510_p10), %v1865_v0  ;;  %153 = vst [vmem:[#allocation2 + $0x38] sm:$0xff] (!%p1510_p10), %v1865_v0 }
  0x3e   : > { %154 = vst [vmem:[#allocation2 + $0x40] sm:$0xff] (!%p1510_p10), %v1865_v0  ;;  %155 = vst [vmem:[#allocation2 + $0x48] sm:$0xff] (!%p1510_p10), %v1865_v0 }
  0x3f   : > { %156 = vst [vmem:[#allocation2 + $0x50] sm:$0xff] (!%p1510_p10), %v1865_v0  ;;  %157 = vst [vmem:[#allocation2 + $0x58] sm:$0xff] (!%p1510_p10), %v1865_v0 }
  0x40   : > { %158 = vst [vmem:[#allocation2 + $0x60] sm:$0xff] (!%p1510_p10), %v1865_v0  ;;  %159 = vst [vmem:[#allocation2 + $0x68] sm:$0xff] (!%p1510_p10), %v1865_v0 }
  0x41   : > { %160 = vst [vmem:[#allocation2 + $0x70] sm:$0xff] %v1865_v0  ;;  %161 = vst [vmem:[#allocation2 + $0x78] sm:$0xff] %v1865_v0 }
  0x42   : > { %179 = vst [vmem:[#allocation4] sm:$0x1] %v1865_v0  ;;  %163 = vst.msk [vmem:[#allocation3] sm:$0xff] %vm162_vm0, %v1865_v0 }
  0x43   : > { %164 = vst.msk [vmem:[#allocation3 + $0x8] sm:$0xff] %vm162_vm0, %v1865_v0  ;;  %165 = vst.msk [vmem:[#allocation3 + $0x10] sm:$0xff] %vm162_vm0, %v1865_v0 }
  0x44   : > { %166 = vst.msk [vmem:[#allocation3 + $0x18] sm:$0xff] %vm162_vm0, %v1865_v0  ;;  %167 = vst.msk [vmem:[#allocation3 + $0x20] sm:$0xff] %vm162_vm0, %v1865_v0 }
  0x45   : > { %168 = vst.msk [vmem:[#allocation3 + $0x28] sm:$0xff] %vm162_vm0, %v1865_v0  ;;  %169 = vst.msk [vmem:[#allocation3 + $0x30] sm:$0xff] %vm162_vm0, %v1865_v0 }
  0x46   : > { %170 = vst.msk [vmem:[#allocation3 + $0x38] sm:$0xff] %vm162_vm0, %v1865_v0  ;;  %171 = vst.msk [vmem:[#allocation3 + $0x40] sm:$0xff] %vm162_vm0, %v1865_v0 }
  0x47   : > { %172 = vst.msk [vmem:[#allocation3 + $0x48] sm:$0xff] %vm162_vm0, %v1865_v0  ;;  %173 = vst.msk [vmem:[#allocation3 + $0x50] sm:$0xff] %vm162_vm0, %v1865_v0 }
  0x48   : > { %174 = vst.msk [vmem:[#allocation3 + $0x58] sm:$0xff] %vm162_vm0, %v1865_v0  ;;  %175 = vst.msk [vmem:[#allocation3 + $0x60] sm:$0xff] %vm162_vm0, %v1865_v0 }
  0x49   : > { %176 = vst.msk [vmem:[#allocation3 + $0x68] sm:$0xff] %vm162_vm0, %v1865_v0  ;;  %177 = vst.msk [vmem:[#allocation3 + $0x70] sm:$0xff] %vm162_vm0, %v1865_v0 }
  0x4a   : > { %178 = vst.msk [vmem:[#allocation3 + $0x78] sm:$0xff] %vm162_vm0, %v1865_v0 }
  0x4b PF: > { %v2005_v1 = vld [vmem:[%s1981_s29 + $0x8] sm:$0xff]  ;;  %v2011_v3 = vld [vmem:[%s1981_s29 + $0x18] sm:$0xff]  ;;  %v2019_v6 = vld [vmem:[%s1981_s29] sm:$0xff]  ;;  %vm1034_vm1 = vcmask 7168   ;;  %p1511_p7 = scmp.ne.s32.totalorder %s1851_s9, 1 }
  0x4c   : > { %v2008_v2 = vld [vmem:[%s1981_s29 + $0x28] sm:$0xff]  ;;  %v2016_v5 = vld [vmem:[%s1981_s29 + $0x38] sm:$0xff]  ;;  %v2022_v7 = vld [vmem:[%s1981_s29 + $0x20] sm:$0xff]  ;;  %393 = vmatprep.mubr.f32.mxu0 %v2005_v1  ;;  %538 = vmatprep.mubr.f32.mxu1 %v2011_v3  ;;  %v2161_v58 = vmul.f32 %v2005_v1, %v2005_v1  ;;  %v2178_v63 = vmul.f32 %v2011_v3, %v2011_v3 }
  0x4d   : > { %2870 = vst [vmem:[#allocation11_spill] sm:$0xff] %v2008_v2  ;;  %v1518_v4 = vpack.c.bf16 %v2008_v2, %v2005_v1  ;;  %2871 = vst [vmem:[#allocation12_spill] sm:$0xff] %v2016_v5  ;;  %v1550_v8 = vpack.c.bf16 %v2016_v5, %v2011_v3  ;;  %v1520_v9 = vpack.c.bf16 %v2022_v7, %v2019_v6  ;;  %v2030_v10 = vld [vmem:[%s1981_s29 + $0x10] sm:$0xff]  ;;  %v2036_v12 = vld [vmem:[%s1981_s29 + $0x48] sm:$0xff] }
  0x4e   : > { %2872 = vst [vmem:[#allocation13_spill] sm:$0xff] %v2022_v7  ;;  %v2033_v11 = vld [vmem:[%s1981_s29 + $0x30] sm:$0xff]  ;;  %2874 = vst [vmem:[#allocation15_spill] sm:$0xff] %v2036_v12  ;;  %v2042_v14 = vld [vmem:[%s1981_s29 + $0x68] sm:$0xff]  ;;  %v2174_v62 = vmul.f32 %v2008_v2, %v2008_v2  ;;  %v2182_v0 = vmul.f32 %v2016_v5, %v2016_v5  ;;  %v2186_v1 = vmul.f32 %v2019_v6, %v2019_v6 }
  0x4f   : > { %2873 = vst [vmem:[#allocation14_spill] sm:$0xff] %v2033_v11  ;;  %1519 = vmatprep.subr.bf16.mxu0 %v1518_v4  ;;  %v1552_v13 = vpack.c.bf16 %v2033_v11, %v2030_v10  ;;  %2875 = vst [vmem:[#allocation16_spill] sm:$0xff] %v2042_v14  ;;  %v2045_v15 = vld [vmem:[%s1981_s29 + $0x58] sm:$0xff]  ;;  %1551 = vmatprep.subr.bf16.mxu1 %v1550_v8  ;;  %v1522_v17 = vpack.c.bf16 %v2042_v14, %v2036_v12  ;;  %v2055_v19 = vld [vmem:[%s1981_s29 + $0x40] sm:$0xff] }
  0x50   : > { %2876 = vst [vmem:[#allocation17_spill] sm:$0xff] %v2045_v15  ;;  %v2048_v16 = vld [vmem:[%s1981_s29 + $0x78] sm:$0xff]  ;;  %1521 = vmatpush1.bf16.xpose.msra.mxu0 %v1520_v9  ;;  %2878 = vst [vmem:[#allocation19_spill] sm:$0xff] %v2055_v19  ;;  %v2058_v20 = vld [vmem:[%s1981_s29 + $0x60] sm:$0xff]  ;;  %v2196_v9 = vmul.f32 %v2022_v7, %v2022_v7  ;;  %v2200_v3 = vmul.f32 %v2030_v10, %v2030_v10 }
  0x51   : > { %2877 = vst [vmem:[#allocation18_spill] sm:$0xff] %v2048_v16  ;;  %v1554_v18 = vpack.c.bf16 %v2048_v16, %v2045_v15  ;;  %1553 = vmatpush1.bf16.xpose.msra.mxu1 %v1552_v13  ;;  %2879 = vst [vmem:[#allocation20_spill] sm:$0xff] %v2058_v20  ;;  %v2061_v21 = vld [vmem:[%s1981_s29 + $0x50] sm:$0xff]  ;;  %1523 = vmatprep.subr.bf16.mxu0 %v1522_v17  ;;  %v2067_v23 = vld [vmem:[%s1981_s29 + $0x88] sm:$0xff]  ;;  %v1524_v27 = vpack.c.bf16 %v2058_v20, %v2055_v19 }
  0x52   : > { %2880 = vst [vmem:[#allocation21_spill] sm:$0xff] %v2061_v21  ;;  %v2064_v22 = vld [vmem:[%s1981_s29 + $0x70] sm:$0xff]  ;;  %2882 = vst [vmem:[#allocation23_spill] sm:$0xff] %v2067_v23  ;;  %v2070_v24 = vld [vmem:[%s1981_s29 + $0xa8] sm:$0xff]  ;;  %v2204_v13 = vmul.f32 %v2033_v11, %v2033_v11 }
  0x53   : > { %1555 = vmatprep.subr.bf16.mxu1 %v1554_v18  ;;  %2881 = vst [vmem:[#allocation22_spill] sm:$0xff] %v2064_v22  ;;  %2883 = vst [vmem:[#allocation24_spill] sm:$0xff] %v2070_v24  ;;  %v2073_v25 = vld [vmem:[%s1981_s29 + $0x98] sm:$0xff]  ;;  %v1556_v28 = vpack.c.bf16 %v2064_v22, %v2061_v21  ;;  %v1526_v29 = vpack.c.bf16 %v2070_v24, %v2067_v23  ;;  %v2087_v31 = vld [vmem:[%s1981_s29 + $0x80] sm:$0xff]  ;;  %v2210_v18 = vmul.f32 %v2058_v20, %v2058_v20 }
  0x54   : > { %2884 = vst [vmem:[#allocation25_spill] sm:$0xff] %v2073_v25  ;;  %v2076_v26 = vld [vmem:[%s1981_s29 + $0xb8] sm:$0xff]  ;;  %2886 = vst [vmem:[#allocation27_spill] sm:$0xff] %v2087_v31  ;;  %v2090_v32 = vld [vmem:[%s1981_s29 + $0xa0] sm:$0xff] }
  0x55   : > { %2885 = vst [vmem:[#allocation26_spill] sm:$0xff] %v2076_v26  ;;  %v1558_v30 = vpack.c.bf16 %v2076_v26, %v2073_v25  ;;  %2887 = vst [vmem:[#allocation28_spill] sm:$0xff] %v2090_v32  ;;  %v2093_v33 = vld [vmem:[%s1981_s29 + $0x90] sm:$0xff]  ;;  %v2099_v35 = vld [vmem:[%s1981_s29 + $0xc8] sm:$0xff]  ;;  %v1528_v39 = vpack.c.bf16 %v2090_v32, %v2087_v31 }
  0x56   : > { %2888 = vst [vmem:[#allocation29_spill] sm:$0xff] %v2093_v33  ;;  %v2096_v34 = vld [vmem:[%s1981_s29 + $0xb0] sm:$0xff]  ;;  %2890 = vst [vmem:[#allocation31_spill] sm:$0xff] %v2099_v35  ;;  %v2102_v36 = vld [vmem:[%s1981_s29 + $0xe8] sm:$0xff] }
  0x57   : > { %2889 = vst [vmem:[#allocation30_spill] sm:$0xff] %v2096_v34  ;;  %2891 = vst [vmem:[#allocation32_spill] sm:$0xff] %v2102_v36  ;;  %v2105_v37 = vld [vmem:[%s1981_s29 + $0xd8] sm:$0xff]  ;;  %v1560_v40 = vpack.c.bf16 %v2096_v34, %v2093_v33  ;;  %v1530_v41 = vpack.c.bf16 %v2102_v36, %v2099_v35  ;;  %v2119_v43 = vld [vmem:[%s1981_s29 + $0xc0] sm:$0xff] }
  0x58   : > { %1525 = vmatpush1.bf16.xpose.msra.mxu0 %v1524_v27  ;;  %v2108_v38 = vld [vmem:[%s1981_s29 + $0xf8] sm:$0xff]  ;;  %2893 = vst [vmem:[#allocation34_spill] sm:$0xff] %v2119_v43  ;;  %v2122_v44 = vld [vmem:[%s1981_s29 + $0xe0] sm:$0xff]  ;;  %v2125_v45 = vld [vmem:[%s1981_s29 + $0xd0] sm:$0xff] }
  0x59   : > { %1557 = vmatpush1.bf16.xpose.msra.mxu1 %v1556_v28  ;;  %1527 = vmatprep.subr.bf16.mxu0 %v1526_v29  ;;  %2892 = vst [vmem:[#allocation33_spill] sm:$0xff] %v2108_v38  ;;  %v1562_v42 = vpack.c.bf16 %v2108_v38, %v2105_v37  ;;  %2894 = vst [vmem:[#allocation35_spill] sm:$0xff] %v2122_v44  ;;  %v2128_v46 = vld [vmem:[%s1981_s29 + $0xf0] sm:$0xff]  ;;  %v2131_v47 = vld [vmem:[%s1981_s29 + $0x108] sm:$0xff]  ;;  %v1532_v51 = vpack.c.bf16 %v2122_v44, %v2119_v43 }
  0x5a   : > { %1559 = vmatprep.subr.bf16.mxu1 %v1558_v30  ;;  %2895 = vst [vmem:[#allocation36_spill] sm:$0xff] %v2125_v45  ;;  %2896 = vst [vmem:[#allocation37_spill] sm:$0xff] %v2128_v46  ;;  %v2134_v48 = vld [vmem:[%s1981_s29 + $0x128] sm:$0xff]  ;;  %v2137_v49 = vld [vmem:[%s1981_s29 + $0x118] sm:$0xff]  ;;  %v1564_v52 = vpack.c.bf16 %v2128_v46, %v2125_v45  ;;  %v2218_v29 = vmul.f32 %v2042_v14, %v2042_v14  ;;  %v2222_v30 = vmul.f32 %v2055_v19, %v2055_v19 }
  0x5b   : > { %2897 = vst [vmem:[#allocation38_spill] sm:$0xff] %v2131_v47  ;;  %2898 = vst [vmem:[#allocation39_spill] sm:$0xff] %v2134_v48  ;;  %v2140_v50 = vld [vmem:[%s1981_s29 + $0x138] sm:$0xff]  ;;  %v1534_v53 = vpack.c.bf16 %v2134_v48, %v2131_v47  ;;  %v2151_v55 = vld [vmem:[%s1981_s29 + $0x100] sm:$0xff]  ;;  %v2264_v20 = vmul.f32 %v2122_v44, %v2122_v44  ;;  %v2283_v44 = vmul.f32 %v2125_v45, %v2125_v45 }
  0x5c   : > { %v1566_v54 = vpack.c.bf16 %v2140_v50, %v2137_v49  ;;  %2899 = vst [vmem:[#allocation40_spill] sm:$0xff] %v2151_v55  ;;  %v2154_v56 = vld [vmem:[%s1981_s29 + $0x120] sm:$0xff]  ;;  %v2157_v57 = vld [vmem:[%s1981_s29 + $0x110] sm:$0xff]  ;;  %v2167_v60 = vld [vmem:[%s1981_s29 + $0x148] sm:$0xff]  ;;  %v2296_v19 = vmul.f32 %v2045_v15, %v2045_v15 }
  0x5d   : > { %2900 = vst [vmem:[#allocation41_spill] sm:$0xff] %v2154_v56  ;;  %2901 = vst [vmem:[#allocation42_spill] sm:$0xff] %v2157_v57  ;;  %v2164_v59 = vld [vmem:[%s1981_s29 + $0x130] sm:$0xff]  ;;  %v2170_v61 = vld [vmem:[%s1981_s29 + $0x168] sm:$0xff]  ;;  %v1536_v17 = vpack.c.bf16 %v2154_v56, %v2151_v55 }
  0x5e   : > { %2902 = vst [vmem:[#allocation43_spill] sm:$0xff] %v2164_v59  ;;  %2903 = vst [vmem:[#allocation44_spill] sm:$0xff] %v2167_v60  ;;  %v2189_v4 = vld [vmem:[%s1981_s29 + $0x158] sm:$0xff]  ;;  %v1568_v27 = vpack.c.bf16 %v2164_v59, %v2157_v57  ;;  %v1538_v28 = vpack.c.bf16 %v2170_v61, %v2167_v60  ;;  %v2273_v14 = vld [vmem:[%s1981_s29 + $0x150] sm:$0xff] }
  0x5f   : > { %2904 = vst [vmem:[#allocation45_spill] sm:$0xff] %v2170_v61  ;;  %v2192_v8 = vld [vmem:[%s1981_s29 + $0x178] sm:$0xff]  ;;  %2905 = vst [vmem:[#allocation46_spill] sm:$0xff] %v2210_v18 }
  0x60   : > { %1529 = vmatpush1.bf16.xpose.msra.mxu0 %v1528_v39  ;;  %2906 = vst [vmem:[#allocation47_spill] sm:$0xff] %v2222_v30  ;;  %v2226_v39 = vmul.f32 %v2061_v21, %v2061_v21  ;;  %2912 = vst [vmem:[#allocation53_spill] sm:$0xff] %v2264_v20  ;;  %v2292_v21 = vld [vmem:[%s1981_s29 + $0x1a8] sm:$0xff]  ;;  %v2305_v45 = vld [vmem:[%s1981_s29 + $0x198] sm:$0xff] }
  0x61   : > { %1561 = vmatpush1.bf16.xpose.msra.mxu1 %v1560_v40  ;;  %1531 = vmatprep.subr.bf16.mxu0 %v1530_v41  ;;  %v2230_v40 = vmul.f32 %v2064_v22, %v2064_v22  ;;  %v1570_v41 = vpack.c.bf16 %v2192_v8, %v2189_v4  ;;  %v943_v22 = vadd.f32 %v2174_v62, %v2196_v9 }
  0x62   : > { %1563 = vmatprep.subr.bf16.mxu1 %v1562_v42  ;;  %v2236_v42 = vmul.f32 %v2087_v31, %v2087_v31  ;;  %v2254_v31 = vmul.f32 %v2096_v34, %v2096_v34  ;;  %v2270_v34 = vld [vmem:[%s1981_s29 + $0x160] sm:$0xff]  ;;  %2915 = vst [vmem:[#allocation56_spill] sm:$0xff] %v2273_v14  ;;  %2918 = vst [vmem:[#allocation59_spill] sm:$0xff] %v2292_v21 }
  0x63   : > { %2914 = vst [vmem:[#allocation55_spill] sm:$0xff] %v2270_v34  ;;  %v944_v2 = vadd.f32 %v943_v22, %v2204_v13  ;;  %v2341_v22 = vmul.f32 %v2099_v35, %v2099_v35 }
  0x64   : > { %2907 = vst [vmem:[#allocation48_spill] sm:$0xff] %v2236_v42  ;;  %2910 = vst [vmem:[#allocation51_spill] sm:$0xff] %v2254_v31 }
  0x65   : > { %2921 = vst [vmem:[#allocation62_spill] sm:$0xff] %v2341_v22 }
  0x68   : > { %1533 = vmatpush1.bf16.xpose.msra.mxu0 %v1532_v51  ;;  %v2240_v51 = vmul.f32 %v2090_v32, %v2090_v32  ;;  %v2258_v32 = vmul.f32 %v2119_v43, %v2119_v43 }
  0x69   : > { %1565 = vmatpush1.bf16.xpose.msra.mxu1 %v1564_v52  ;;  %1535 = vmatprep.subr.bf16.mxu0 %v1534_v53  ;;  %v2244_v52 = vmul.f32 %v2036_v12, %v2036_v12  ;;  %v953_v53 = vadd.f32 %v2218_v29, %v2210_v18  ;;  %v938_v18 = vadd.f32 %v2161_v58, %v2186_v1 }
  0x6a   : > { %1567 = vmatprep.subr.bf16.mxu1 %v1566_v54  ;;  %2908 = vst [vmem:[#allocation49_spill] sm:$0xff] %v2240_v51  ;;  %v2250_v54 = vmul.f32 %v2093_v33, %v2093_v33  ;;  %2911 = vst [vmem:[#allocation52_spill] sm:$0xff] %v2258_v32  ;;  %v2267_v33 = vld [vmem:[%s1981_s29 + $0x140] sm:$0xff]  ;;  %v968_v35 = vadd.f32 %v2341_v22, %v2258_v32  ;;  %v2396_v32 = vmul.f32 %v2073_v25, %v2073_v25 }
  0x6b   : > { %2913 = vst [vmem:[#allocation54_spill] sm:$0xff] %v2267_v33  ;;  %v948_v43 = vadd.f32 %v2244_v52, %v2222_v30  ;;  %v2312_v30 = vmul.f32 %v2048_v16, %v2048_v16  ;;  %v954_v11 = vadd.f32 %v953_v53, %v2230_v40  ;;  %v939_v5 = vadd.f32 %v938_v18, %v2200_v3 }
  0x6c   : > { %2909 = vst [vmem:[#allocation50_spill] sm:$0xff] %v2250_v54 }
  0x6d   : > { %v949_v15 = vadd.f32 %v948_v43, %v2226_v39  ;;  %v2330_v43 = vmul.f32 %v2102_v36, %v2102_v36  ;;  %v2346_v36 = vmul.f32 %v2151_v55, %v2151_v55 }
  0x6f   : > { %2920 = vst [vmem:[#allocation61_spill] sm:$0xff] %v2330_v43  ;;  %v950_v53 = vadd.f32 %v949_v15, %v2296_v19  ;;  %2922 = vst [vmem:[#allocation63_spill] sm:$0xff] %v2346_v36  ;;  %v973_v15 = vadd.f32 %v2330_v43, %v2264_v20  ;;  %v2358_v20 = vmul.f32 %v2154_v56, %v2154_v56  ;;  %v2392_v56 = vld [vmem:[%s1981_s29 + $0x1e8] sm:$0xff] }
  0x70   : > { %1537 = vmatpush1.bf16.xpose.msra.mxu0 %v1536_v17  ;;  %v2277_v17 = vmul.f32 %v2070_v24, %v2070_v24  ;;  %v2300_v24 = vmul.f32 %v2067_v23, %v2067_v23  ;;  %v1540_v23 = vpack.c.bf16 %v2270_v34, %v2267_v33 }
  0x71   : > { %1569 = vmatpush1.bf16.xpose.msra.mxu1 %v1568_v27  ;;  %1539 = vmatprep.subr.bf16.mxu0 %v1538_v28  ;;  %v2286_v27 = vld [vmem:[%s1981_s29 + $0x170] sm:$0xff]  ;;  %v2289_v28 = vld [vmem:[%s1981_s29 + $0x188] sm:$0xff]  ;;  %2923 = vst [vmem:[#allocation64_spill] sm:$0xff] %v2358_v20 }
  0x72   : > { %2916 = vst [vmem:[#allocation57_spill] sm:$0xff] %v2277_v17  ;;  %1571 = vmatprep.subr.bf16.mxu1 %v1570_v41  ;;  %2917 = vst [vmem:[#allocation58_spill] sm:$0xff] %v2286_v27  ;;  %v2308_v41 = vld [vmem:[%s1981_s29 + $0x1b8] sm:$0xff]  ;;  %v963_v12 = vadd.f32 %v2277_v17, %v2240_v51  ;;  %v958_v7 = vadd.f32 %v2300_v24, %v2236_v42  ;;  %v1572_v16 = vpack.c.bf16 %v2286_v27, %v2273_v14 }
  0x73   : > { %2919 = vst [vmem:[#allocation60_spill] sm:$0xff] %v2300_v24  ;;  %v1542_v51 = vpack.c.bf16 %v2292_v21, %v2289_v28  ;;  %v2335_v17 = vmul.f32 %v2128_v46, %v2128_v46  ;;  %v1574_v18 = vpack.c.bf16 %v2308_v41, %v2305_v45  ;;  %v940_v42 = vadd.f32 %v939_v5, %v2178_v63 }
  0x74   : > { %951 = vadd.xlane.f32.xlu1 %v950_v53  ;;  %v955_v46 = vadd.f32 %v954_v11, %v2312_v30  ;;  %v964_v24 = vadd.f32 %v963_v12, %v2254_v31  ;;  %v945_v5 = vadd.f32 %v944_v2, %v2182_v0  ;;  %v959_v55 = vadd.f32 %v958_v7, %v2250_v54  ;;  %v2361_v11 = vld [vmem:[%s1981_s29 + $0x180] sm:$0xff]  ;;  %v2389_v53 = vld [vmem:[%s1981_s29 + $0x1c8] sm:$0xff] }
  0x75   : > { %941 = vadd.xlane.f32.xlu0 %v940_v42  ;;  %v2364_v12 = vld [vmem:[%s1981_s29 + $0x1a0] sm:$0xff]  ;;  %v2371_v42 = vmul.f32 %v2076_v26, %v2076_v26  ;;  %v2375_v2 = vmul.f32 %v2134_v48, %v2134_v48  ;;  %v2379_v7 = vmul.f32 %v2157_v57, %v2157_v57  ;;  %v2400_v48 = vmul.f32 %v2131_v47, %v2131_v47 }
  0x76   : > { %2924 = vst [vmem:[#allocation65_spill] sm:$0xff] %v2364_v12  ;;  %v2404_v57 = vmul.f32 %v2270_v34, %v2270_v34  ;;  %v974_v22 = vadd.f32 %v973_v15, %v2335_v17  ;;  %v1544_v47 = vpack.c.bf16 %v2364_v12, %v2361_v11  ;;  %v960_v34 = vadd.f32 %v959_v55, %v2396_v32 }
  0x77   : > { %2925 = vst [vmem:[#allocation66_spill] sm:$0xff] %v2375_v2  ;;  %2927 = vst [vmem:[#allocation68_spill] sm:$0xff] %v2400_v48  ;;  %v983_v26 = vadd.f32 %v2375_v2, %v2358_v20  ;;  %v965_v43 = vadd.f32 %v964_v24, %v2371_v42  ;;  %v978_v31 = vadd.f32 %v2400_v48, %v2346_v36 }
  0x78   : > { %1541 = vmatpush1.bf16.xpose.msra.mxu0 %v1540_v23  ;;  %v2367_v23 = vld [vmem:[%s1981_s29 + $0x190] sm:$0xff]  ;;  %2928 = vst [vmem:[#allocation69_spill] sm:$0xff] %v2404_v57  ;;  %956 = vadd.xlane.f32.xlu1 %v955_v46  ;;  %v969_v54 = vadd.f32 %v968_v35, %v2283_v44  ;;  %v1546_v46 = vpack.c.bf16 %v2392_v56, %v2389_v53 }
  0x79   : > { %1573 = vmatpush1.bf16.xpose.msra.mxu1 %v1572_v16  ;;  %1543 = vmatprep.subr.bf16.mxu0 %v1542_v51  ;;  %v2383_v16 = vmul.f32 %v2164_v59, %v2164_v59  ;;  %v2386_v51 = vld [vmem:[%s1981_s29 + $0x1b0] sm:$0xff]  ;;  %v2407_v59 = vld [vmem:[%s1981_s29 + $0x1d8] sm:$0xff]  ;;  %v2428_v24 = vmul.f32 %v2108_v38, %v2108_v38  ;;  %v2432_v15 = vmul.f32 %v2170_v61, %v2170_v61 }
  0x7a   : > { %1575 = vmatprep.subr.bf16.mxu1 %v1574_v18  ;;  %2926 = vst [vmem:[#allocation67_spill] sm:$0xff] %v2386_v51  ;;  %v2410_v18 = vld [vmem:[%s1981_s29 + $0x1f8] sm:$0xff]  ;;  %946 = vadd.xlane.f32.xlu0 %v945_v5  ;;  %v1576_v25 = vpack.c.bf16 %v2386_v51, %v2367_v23  ;;  %v2436_v5 = vmul.f32 %v2267_v33, %v2267_v33 }
  0x7b   : > { %v1578_v35 = vpack.c.bf16 %v2410_v18, %v2407_v59  ;;  %v2442_v55 = vmul.f32 %v2105_v37, %v2105_v37  ;;  %v2446_v20 = vmul.f32 %v2167_v60, %v2167_v60  ;;  %v2450_v61 = vmul.f32 %v2286_v27, %v2286_v27 }
  0x7c   : > { %2929 = vst [vmem:[#allocation70_spill] sm:$0xff] %v2436_v5  ;;  %v993_v33 = vadd.f32 %v2432_v15, %v2404_v57  ;;  %966 = vadd.xlane.f32.xlu1 %v965_v43  ;;  %v975_v36 = vadd.f32 %v974_v22, %v2428_v24  ;;  %v984_v38 = vadd.f32 %v983_v26, %v2383_v16  ;;  %v2465_v43 = vld [vmem:[%s1981_s29 + $0x1c0] sm:$0xff] }
  0x7d   : > { %v988_v2 = vadd.f32 %v2446_v20, %v2436_v5  ;;  %v970_v60 = vadd.f32 %v969_v54, %v2442_v55  ;;  %v979_v27 = vadd.f32 %v978_v31, %v2379_v7  ;;  %v2462_v48 = vmul.f32 %v2364_v12, %v2364_v12  ;;  %v2468_v22 = vld [vmem:[%s1981_s29 + $0x1e0] sm:$0xff] }
  0x7e   : > { %961 = vadd.xlane.f32.xlu0 %v960_v34  ;;  %2931 = vst [vmem:[#allocation72_spill] sm:$0xff] %v2468_v22  ;;  %v2472_v26 = vmul.f32 %v2140_v50, %v2140_v50  ;;  %v2476_v34 = vmul.f32 %v2292_v21, %v2292_v21  ;;  %v2480_v31 = vmul.f32 %v2273_v14, %v2273_v14 }
  0x7f   : > { %2930 = vst [vmem:[#allocation71_spill] sm:$0xff] %v2462_v48  ;;  %v2490_v54 = vmul.f32 %v2137_v49, %v2137_v49  ;;  %v994_v21 = vadd.f32 %v993_v33, %v2450_v61  ;;  %v1548_v14 = vpack.c.bf16 %v2468_v22, %v2465_v43  ;;  %v2502_v5 = vmul.f32 %v2386_v51, %v2386_v51 }
  0x80   : > { %1545 = vmatpush1.bf16.xpose.msra.mxu0 %v1544_v47  ;;  %v2483_v47 = vld [vmem:[%s1981_s29 + $0x1d0] sm:$0xff]  ;;  %976 = vadd.xlane.f32.xlu1 %v975_v36  ;;  %v985_v12 = vadd.f32 %v984_v38, %v2472_v26  ;;  %v989_v57 = vadd.f32 %v988_v2, %v2480_v31  ;;  %v1582_v36 = vpack.c.bf16 %v2174_v62, %v2161_v58 }
  0x81   : > { %1577 = vmatpush1.bf16.xpose.msra.mxu1 %v1576_v25  ;;  %1547 = vmatprep.subr.bf16.mxu0 %v1546_v46  ;;  %v2486_v25 = vld [vmem:[%s1981_s29 + $0x1f0] sm:$0xff]  ;;  %v1003_v46 = vadd.f32 %v2476_v34, %v2462_v48  ;;  %v2510_v33 = vmul.f32 %v2192_v8, %v2192_v8  ;;  %v1614_v38 = vpack.c.bf16 %v2182_v0, %v2178_v63 }
  0x82   : > { %1579 = vmatprep.subr.bf16.mxu1 %v1578_v35  ;;  %2932 = vst [vmem:[#allocation73_spill] sm:$0xff] %v2486_v25  ;;  %971 = vadd.xlane.f32.xlu0 %v970_v60  ;;  %v980_v35 = vadd.f32 %v979_v27, %v2490_v54  ;;  %v1580_v48 = vpack.c.bf16 %v2486_v25, %v2483_v47 }
  0x83   : > { %v2516_v60 = vmul.f32 %v2189_v4, %v2189_v4  ;;  %v2520_v27 = vmul.f32 %v2361_v11, %v2361_v11  ;;  %v2524_v2 = vmul.f32 %v2289_v28, %v2289_v28  ;;  %v995_v58 = vadd.f32 %v994_v21, %v2510_v33 }
  0x84   : > { %986 = vadd.xlane.f32.xlu1 %v985_v12  ;;  %v1004_v62 = vadd.f32 %v1003_v46, %v2502_v5  ;;  %v2530_v63 = vmul.f32 %v2468_v22, %v2468_v22  ;;  %v2534_v0 = vmul.f32 %v2392_v56, %v2392_v56  ;;  %v2541_v21 = vmul.f32 %v2308_v41, %v2308_v41 }
  0x85   : > { %v990_v51 = vadd.f32 %v989_v57, %v2516_v60  ;;  %v998_v12 = vadd.f32 %v2524_v2, %v2520_v27  ;;  %v2547_v46 = vmul.f32 %v2367_v23, %v2367_v23  ;;  %v1586_v22 = vpack.c.bf16 %v2218_v29, %v2244_v52 }
  0x86   : > { %981 = vadd.xlane.f32.xlu0 %v980_v35  ;;  %v1005_v57 = vadd.f32 %v1004_v62, %v2541_v21  ;;  %v2554_v35 = vmul.f32 %v2486_v25, %v2486_v25 }
  0x88   : > { %1549 = vmatpush1.bf16.xpose.msra.mxu0 %v1548_v14  ;;  %v1013_v14 = vadd.f32 %v2534_v0, %v2530_v63  ;;  %996 = vadd.xlane.f32.xlu1 %v995_v58  ;;  %v1618_v58 = vpack.c.bf16 %v2312_v30, %v2296_v19  ;;  %v2580_v19 = vmul.f32 %v2410_v18, %v2410_v18  ;;  %v2934_v30 = vld [vmem:[#allocation12_spill] sm:$0xff] }
  0x89   : > { %1581 = vmatpush1.bf16.xpose.msra.mxu1 %v1580_v48  ;;  %1583 = vmatprep.subr.bf16.mxu0 %v1582_v36  ;;  %v1584_v48 = vpack.c.bf16 %v2196_v9, %v2186_v1  ;;  %v1616_v36 = vpack.c.bf16 %v2204_v13, %v2200_v3  ;;  %v2566_v1 = vmul.f32 %v2465_v43, %v2465_v43  ;;  %v2933_v13 = vld [vmem:[#allocation11_spill] sm:$0xff] }
  0x8a   : > { %1615 = vmatprep.subr.bf16.mxu1 %v1614_v38  ;;  %991 = vadd.xlane.f32.xlu0 %v990_v51  ;;  %v999_v38 = vadd.f32 %v998_v12, %v2547_v46  ;;  %v1014_v62 = vadd.f32 %v1013_v14, %v2554_v35  ;;  %v2571_v9 = vmul.f32 %v2305_v45, %v2305_v45  ;;  %v2935_v51 = vld [vmem:[#allocation13_spill] sm:$0xff]  ;;  %v2936_v12 = vld [vmem:[#allocation14_spill] sm:$0xff]  ;;  %v2937_v14 = vld [vmem:[#allocation15_spill] sm:$0xff] }
  0x8b   : > { %v2575_v3 = vmul.f32 %v2389_v53, %v2389_v53 }
  0x8c   : > { %1006 = vadd.xlane.f32.xlu1 %v1005_v57  ;;  %v1000_v29 = vadd.f32 %v999_v38, %v2571_v9  ;;  %v1015_v52 = vadd.f32 %v1014_v62, %v2580_v19  ;;  %v2938_v57 = vld [vmem:[#allocation47_spill] sm:$0xff]  ;;  %v2940_v38 = vld [vmem:[#allocation17_spill] sm:$0xff] }
  0x8e   : > { %1001 = vadd.xlane.f32.xlu0 %v1000_v29  ;;  %v2947_v29 = vld [vmem:[#allocation20_spill] sm:$0xff] }
  0x8f   : > { %394 = vmatmul.mubr.f32.vlgmr.msra.gmra.mrb[0].mxu0 %v2019_v6  ;;  %v1008_v6 = vadd.f32 %v2575_v3, %v2566_v1 }
  0x90   : > { %539 = vmatmul.mubr.f32.vlgmr.msra.gmra.mrb[0].mxu1 %v2030_v10  ;;  %1585 = vmatpush1.bf16.xpose.msra.mxu0 %v1584_v48  ;;  %v2590_v10 = vmul.f32 %v2483_v47, %v2483_v47  ;;  %v2939_v48 = vld [vmem:[#allocation46_spill] sm:$0xff] }
  0x91   : > { %1617 = vmatpush1.bf16.xpose.msra.mxu1 %v1616_v36  ;;  %398 = vmatprep.mubr.f32.mxu0 %v2933_v13  ;;  %v1588_v36 = vpack.c.bf16 %v2939_v48, %v2938_v57  ;;  %v2941_v13 = vld [vmem:[#allocation60_spill] sm:$0xff]  ;;  %v2951_v57 = vld [vmem:[#allocation49_spill] sm:$0xff] }
  0x92   : > { %543 = vmatprep.mubr.f32.mxu1 %v2934_v30  ;;  %1587 = vmatprep.subr.bf16.mxu0 %v1586_v22  ;;  %v1620_v22 = vpack.c.bf16 %v2230_v40, %v2226_v39  ;;  %v1009_v62 = vadd.f32 %v1008_v6, %v2590_v10  ;;  %v2942_v30 = vld [vmem:[#allocation57_spill] sm:$0xff]  ;;  %v2945_v39 = vld [vmem:[#allocation16_spill] sm:$0xff]  ;;  %v2946_v6 = vld [vmem:[#allocation18_spill] sm:$0xff] }
  0x93   : > { %399 = vmatmul.mubr.f32.gmra.mrb[2].mxu0 %v2935_v51  ;;  %1619 = vmatprep.subr.bf16.mxu1 %v1618_v58  ;;  %v1590_v25 = vpack.c.bf16 %v2942_v30, %v2941_v13  ;;  %v2943_v58 = vld [vmem:[#allocation19_spill] sm:$0xff]  ;;  %v1622_v51 = vpack.c.bf16 %v2371_v42, %v2396_v32  ;;  %v2950_v42 = vld [vmem:[#allocation48_spill] sm:$0xff]  ;;  %v2956_v30 = vld [vmem:[#allocation61_spill] sm:$0xff] }
  0x94   : > { %544 = vmatmul.mubr.f32.gmra.mrb[2].mxu1 %v2936_v12  ;;  %403 = vmatprep.mubr.f32.mxu0 %v2937_v14  ;;  %v2608_v12 = vmul.f32 %v2407_v59, %v2407_v59  ;;  %v2944_v14 = vld [vmem:[#allocation21_spill] sm:$0xff]  ;;  %v2949_v32 = vld [vmem:[#allocation23_spill] sm:$0xff]  ;;  %v1592_v48 = vpack.c.bf16 %v2951_v57, %v2950_v42 }
  0x95   : > { %548 = vmatprep.mubr.f32.mxu1 %v2940_v38  ;;  %1016 = vadd.xlane.f32.xlu1 %v1015_v52  ;;  %v2948_v52 = vld [vmem:[#allocation22_spill] sm:$0xff]  ;;  %v2952_v38 = vld [vmem:[#allocation25_spill] sm:$0xff] }
  0x96   : > { %v1010_v40 = vadd.f32 %v1009_v62, %v2608_v12  ;;  %v2955_v62 = vld [vmem:[#allocation62_spill] sm:$0xff]  ;;  %v2965_v42 = vld [vmem:[#allocation53_spill] sm:$0xff] }
  0x97   : > { %404 = vmatmul.mubr.f32.gmra.mrb[4].mxu0 %v2943_v58  ;;  %v1594_v58 = vpack.c.bf16 %v2956_v30, %v2955_v62  ;;  %v2970_v62 = vld [vmem:[#allocation32_spill] sm:$0xff]  ;;  %v2971_v30 = vld [vmem:[#allocation33_spill] sm:$0xff] }
  0x98   : > { %549 = vmatmul.mubr.f32.gmra.mrb[4].mxu1 %v2944_v14  ;;  %1589 = vmatpush1.bf16.xpose.msra.mxu0 %v1588_v36  ;;  %v2953_v36 = vld [vmem:[#allocation50_spill] sm:$0xff]  ;;  %v2958_v14 = vld [vmem:[#allocation29_spill] sm:$0xff] }
  0x99   : > { %1621 = vmatpush1.bf16.xpose.msra.mxu1 %v1620_v22  ;;  %408 = vmatprep.mubr.f32.mxu0 %v2945_v39  ;;  %v2954_v22 = vld [vmem:[#allocation51_spill] sm:$0xff]  ;;  %v2959_v39 = vld [vmem:[#allocation24_spill] sm:$0xff] }
  0x9a   : > { %553 = vmatprep.mubr.f32.mxu1 %v2946_v6  ;;  %1591 = vmatprep.subr.bf16.mxu0 %v1590_v25  ;;  %v1624_v13 = vpack.c.bf16 %v2954_v22, %v2953_v36  ;;  %v2957_v25 = vld [vmem:[#allocation27_spill] sm:$0xff]  ;;  %v2960_v6 = vld [vmem:[#allocation26_spill] sm:$0xff]  ;;  %v1630_v22 = vpack.c.bf16 %v2472_v26, %v2490_v54  ;;  %v1632_v26 = vpack.c.bf16 %v2383_v16, %v2379_v7 }
  0x9b   : > { %409 = vmatmul.mubr.f32.gmra.mrb[6].mxu0 %v2947_v29  ;;  %1623 = vmatprep.subr.bf16.mxu1 %v1622_v51  ;;  %v1626_v51 = vpack.c.bf16 %v2428_v24, %v2442_v55  ;;  %v2961_v29 = vld [vmem:[#allocation28_spill] sm:$0xff]  ;;  %v1628_v24 = vpack.c.bf16 %v2335_v17, %v2283_v44  ;;  %v2968_v36 = vld [vmem:[#allocation34_spill] sm:$0xff]  ;;  %v2973_v44 = vld [vmem:[#allocation37_spill] sm:$0xff]  ;;  %v1602_v54 = vpack.c.bf16 %v2432_v15, %v2446_v20 }
  0x9c   : > { %554 = vmatmul.mubr.f32.gmra.mrb[6].mxu1 %v2948_v52  ;;  %413 = vmatprep.mubr.f32.mxu0 %v2949_v32  ;;  %v2963_v52 = vld [vmem:[#allocation31_spill] sm:$0xff]  ;;  %v2964_v32 = vld [vmem:[#allocation52_spill] sm:$0xff]  ;;  %v2974_v17 = vld [vmem:[#allocation38_spill] sm:$0xff] }
  0x9d   : > { %558 = vmatprep.mubr.f32.mxu1 %v2952_v38  ;;  %1011 = vadd.xlane.f32.xlu0 %v1010_v40  ;;  %v2962_v40 = vld [vmem:[#allocation30_spill] sm:$0xff]  ;;  %v1596_v57 = vpack.c.bf16 %v2965_v42, %v2964_v32  ;;  %v2966_v55 = vld [vmem:[#allocation68_spill] sm:$0xff]  ;;  %v2981_v7 = vld [vmem:[#allocation43_spill] sm:$0xff] }
  0x9e   : > { %v2982_v20 = vld [vmem:[#allocation44_spill] sm:$0xff]  ;;  %v2983_v16 = vld [vmem:[#allocation70_spill] sm:$0xff]  ;;  %v2984_v15 = vld [vmem:[#allocation69_spill] sm:$0xff] }
  0x9f   : > { %414 = vmatmul.mubr.f32.gmra.mrb[8].mxu0 %v2957_v25  ;;  %v2976_v25 = vld [vmem:[#allocation64_spill] sm:$0xff]  ;;  %v2987_v42 = vld [vmem:[#allocation45_spill] sm:$0xff] }
  0xa0   : > { %559 = vmatmul.mubr.f32.gmra.mrb[8].mxu1 %v2958_v14  ;;  %1593 = vmatpush1.bf16.xpose.msra.mxu0 %v1592_v48  ;;  %v2967_v48 = vld [vmem:[#allocation66_spill] sm:$0xff]  ;;  %v2977_v14 = vld [vmem:[#allocation40_spill] sm:$0xff] }
  0xa1   : > { %1625 = vmatpush1.bf16.xpose.msra.mxu1 %v1624_v13  ;;  %418 = vmatprep.mubr.f32.mxu0 %v2959_v39  ;;  %v1598_v38 = vpack.c.bf16 %v2967_v48, %v2966_v55  ;;  %v2969_v13 = vld [vmem:[#allocation36_spill] sm:$0xff]  ;;  %v1634_v39 = vpack.c.bf16 %v2510_v33, %v2516_v60  ;;  %v1636_v33 = vpack.c.bf16 %v2450_v61, %v2480_v31  ;;  %v2989_v61 = vld [vmem:[#allocation58_spill] sm:$0xff] }
  0xa2   : > { %563 = vmatprep.mubr.f32.mxu1 %v2960_v6  ;;  %1595 = vmatprep.subr.bf16.mxu0 %v1594_v58  ;;  %v2975_v58 = vld [vmem:[#allocation63_spill] sm:$0xff]  ;;  %v2978_v6 = vld [vmem:[#allocation42_spill] sm:$0xff]  ;;  %v1606_v60 = vpack.c.bf16 %v2476_v34, %v2524_v2  ;;  %v2986_v32 = vld [vmem:[#allocation56_spill] sm:$0xff]  ;;  %v1640_v2 = vpack.c.bf16 %v2502_v5, %v2547_v46 }
  0xa3   : > { %419 = vmatmul.mubr.f32.gmra.mrb[10].mxu0 %v2961_v29  ;;  %1627 = vmatprep.subr.bf16.mxu1 %v1626_v51  ;;  %v1600_v51 = vpack.c.bf16 %v2976_v25, %v2975_v58  ;;  %v2979_v29 = vld [vmem:[#allocation39_spill] sm:$0xff]  ;;  %v865_v48 = vld [vmem:[#allocation3 + $0x38] sm:$0xff] }
  0xa4   : > { %564 = vmatmul.mubr.f32.gmra.mrb[10].mxu1 %v2962_v40  ;;  %423 = vmatprep.mubr.f32.mxu0 %v2963_v52  ;;  %v1604_v40 = vpack.c.bf16 %v2984_v15, %v2983_v16  ;;  %v1638_v52 = vpack.c.bf16 %v2541_v21, %v2571_v9  ;;  %v2990_v34 = vld [vmem:[#allocation71_spill] sm:$0xff]  ;;  %v1610_v21 = vpack.c.bf16 %v2534_v0, %v2575_v3 }
  0xa5   : > { %568 = vmatprep.mubr.f32.mxu1 %v2105_v37  ;;  %v2972_v37 = vld [vmem:[#allocation35_spill] sm:$0xff]  ;;  %v1608_v31 = vpack.c.bf16 %v2990_v34, %v2520_v27  ;;  %v1866_v27 = vmov 1.0  }
  0xa6   : > { %v2993_v5 = vld [vmem:[#allocation67_spill] sm:$0xff] }
  0xa7   : > { %424 = vmatmul.mubr.f32.gmra.mrb[12].mxu0 %v2968_v36  ;;  %v864_v36 = vld [vmem:[#allocation3 + $0x30] sm:$0xff] }
  0xa8   : > { %569 = vmatmul.mubr.f32.gmra.mrb[12].mxu1 %v2969_v13  ;;  %1597 = vmatpush1.bf16.xpose.msra.mxu0 %v1596_v57 }
  0xa9   : > { %1629 = vmatpush1.bf16.xpose.msra.mxu1 %v1628_v24  ;;  %428 = vmatprep.mubr.f32.mxu0 %v2970_v62 }
  0xaa   : > { %573 = vmatprep.mubr.f32.mxu1 %v2971_v30  ;;  %1599 = vmatprep.subr.bf16.mxu0 %v1598_v38  ;;  %v867_v30 = vld [vmem:[#allocation3 + $0x48] sm:$0xff] }
  0xab   : > { %429 = vmatmul.mubr.f32.gmra.mrb[14].mxu0 %v2972_v37  ;;  %1631 = vmatprep.subr.bf16.mxu1 %v1630_v22 }
  0xac   : > { %574 = vmatmul.mubr.f32.gmra.mrb[14].mxu1 %v2973_v44  ;;  %433 = vmatprep.mubr.f32.mxu0 %v2974_v17  ;;  %v866_v44 = vld [vmem:[#allocation3 + $0x40] sm:$0xff] }
  0xad   : > { %578 = vmatprep.mubr.f32.mxu1 %v2137_v49  ;;  %v2980_v49 = vld [vmem:[#allocation41_spill] sm:$0xff] }
  0xaf   : > { %434 = vmatmul.mubr.f32.gmra.mrb[16].mxu0 %v2977_v14 }
  0xb0   : > { %579 = vmatmul.mubr.f32.gmra.mrb[16].mxu1 %v2978_v6  ;;  %1601 = vmatpush1.bf16.xpose.msra.mxu0 %v1600_v51  ;;  %v869_v51 = vld [vmem:[#allocation3 + $0x58] sm:$0xff] }
  0xb1   : > { %1633 = vmatpush1.bf16.xpose.msra.mxu1 %v1632_v26  ;;  %438 = vmatprep.mubr.f32.mxu0 %v2979_v29  ;;  %v871_v29 = vld [vmem:[#allocation3 + $0x68] sm:$0xff] }
  0xb2   : > { %583 = vmatprep.mubr.f32.mxu1 %v2140_v50  ;;  %1603 = vmatprep.subr.bf16.mxu0 %v1602_v54  ;;  %v2985_v50 = vld [vmem:[#allocation54_spill] sm:$0xff]  ;;  %v868_v54 = vld [vmem:[#allocation3 + $0x50] sm:$0xff] }
  0xb3   : > { %439 = vmatmul.mubr.f32.gmra.mrb[18].mxu0 %v2980_v49  ;;  %1635 = vmatprep.subr.bf16.mxu1 %v1634_v39 }
  0xb4   : > { %584 = vmatmul.mubr.f32.gmra.mrb[18].mxu1 %v2981_v7  ;;  %443 = vmatprep.mubr.f32.mxu0 %v2982_v20  ;;  %v870_v7 = vld [vmem:[#allocation3 + $0x60] sm:$0xff] }
  0xb5   : > { %588 = vmatprep.mubr.f32.mxu1 %v2189_v4  ;;  %v2988_v4 = vld [vmem:[#allocation55_spill] sm:$0xff] }
  0xb7   : > { %444 = vmatmul.mubr.f32.gmra.mrb[20].mxu0 %v2985_v50  ;;  %v872_v50 = vld [vmem:[#allocation3 + $0x70] sm:$0xff] }
  0xb8   : > { %589 = vmatmul.mubr.f32.gmra.mrb[20].mxu1 %v2986_v32  ;;  %1605 = vmatpush1.bf16.xpose.msra.mxu0 %v1604_v40  ;;  %v873_v40 = vld [vmem:[#allocation3 + $0x78] sm:$0xff] }
  0xb9   : > { %1637 = vmatpush1.bf16.xpose.msra.mxu1 %v1636_v33  ;;  %448 = vmatprep.mubr.f32.mxu0 %v2987_v42 }
  0xba   : > { %593 = vmatprep.mubr.f32.mxu1 %v2192_v8  ;;  %1607 = vmatprep.subr.bf16.mxu0 %v1606_v60  ;;  %v1642_v8 = vpack.c.bf16 %v2580_v19, %v2608_v12  ;;  %v863_v19 = vld [vmem:[#allocation3 + $0x28] sm:$0xff]  ;;  %v862_v12 = vld [vmem:[#allocation3 + $0x20] sm:$0xff] }
  0xbb   : > { %449 = vmatmul.mubr.f32.gmra.mrb[22].mxu0 %v2988_v4  ;;  %1639 = vmatprep.subr.bf16.mxu1 %v1638_v52  ;;  %v313_v4 = vld [vmem:[#allocation2] sm:$0xff] }
  0xbc   : > { %594 = vmatmul.mubr.f32.gmra.mrb[22].mxu1 %v2989_v61  ;;  %453 = vmatprep.mubr.f32.mxu0 %v2289_v28  ;;  %v2991_v28 = vld [vmem:[#allocation59_spill] sm:$0xff] }
  0xbd   : > { %598 = vmatprep.mubr.f32.mxu1 %v2305_v45  ;;  %v2992_v45 = vld [vmem:[#allocation65_spill] sm:$0xff] }
  0xbf   : > { %454 = vmatmul.mubr.f32.gmra.mrb[24].mxu0 %v2361_v11  ;;  %v1612_v11 = vpack.c.bf16 %v2530_v63, %v2566_v1 }
  0xc0   : > { %599 = vmatmul.mubr.f32.gmra.mrb[24].mxu1 %v2367_v23  ;;  %1609 = vmatpush1.bf16.xpose.msra.mxu0 %v1608_v31  ;;  %v1644_v23 = vpack.c.bf16 %v2554_v35, %v2590_v10  ;;  %v859_v35 = vld [vmem:[#allocation3 + $0x8] sm:$0xff] }
  0xc1   : > { %1641 = vmatpush1.bf16.xpose.msra.mxu1 %v1640_v2  ;;  %458 = vmatprep.mubr.f32.mxu0 %v2991_v28  ;;  %v314_v28 = vld [vmem:[#allocation2 + $0x8] sm:$0xff] }
  0xc2   : > { %603 = vmatprep.mubr.f32.mxu1 %v2308_v41  ;;  %1611 = vmatprep.subr.bf16.mxu0 %v1610_v21  ;;  %v2994_v41 = vld [vmem:[#allocation72_spill] sm:$0xff] }
  0xc3   : > { %459 = vmatmul.mubr.f32.gmra.mrb[26].mxu0 %v2992_v45  ;;  %1643 = vmatprep.subr.bf16.mxu1 %v1642_v8 }
  0xc4   : > { %604 = vmatmul.mubr.f32.gmra.mrb[26].mxu1 %v2993_v5  ;;  %463 = vmatprep.mubr.f32.mxu0 %v2389_v53  ;;  %v2995_v53 = vld [vmem:[#allocation73_spill] sm:$0xff] }
  0xc5   : > { %608 = vmatprep.mubr.f32.mxu1 %v2407_v59  ;;  %v860_v59 = vld [vmem:[#allocation3 + $0x10] sm:$0xff] }
  0xc7   : > { %464 = vmatmul.mubr.f32.gmra.mrb[28].mxu0 %v2465_v43  ;;  %v858_v43 = vld [vmem:[#allocation3] sm:$0xff] }
  0xc8   : > { %609 = vmatmul.mubr.f32.gmra.mrb[28].mxu1 %v2483_v47  ;;  %1613 = vmatpush1.bf16.xpose.msra.mxu0 %v1612_v11 }
  0xc9   : > { %1645 = vmatpush1.bf16.xpose.msra.mxu1 %v1644_v23  ;;  %468 = vmatprep.mubr.f32.mxu0 %v2392_v56  ;;  %v861_v56 = vld [vmem:[#allocation3 + $0x18] sm:$0xff] }
  0xca   : > { %613 = vmatprep.mubr.f32.mxu1 %v2410_v18 }
  0xcb   : > { %469 = vmatmul.mubr.f32.gmra.mrb[30].mxu0 %v2994_v41 }
  0xcc   : > { %614 = vmatmul.mubr.f32.gmra.mrb[30].mxu1 %v2995_v53  ;;  %780 = vmatprep.mubr.f32.mxu0 %v1866_v27 }
  0xcd   : > { %850 = vmatprep.mubr.f32.mxu1 %v1866_v27 }
  0xcf   : > { %781 = vmatmul.mubr.f32.vlgmr.msra.gmra.mrb[32].mxu0 %v1866_v27 }
  0xd0   : > { %851 = vmatmul.mubr.f32.vlgmr.msra.gmra.mrb[32].mxu1 %v1866_v27  ;;  %v315_v27 = vld [vmem:[#allocation2 + $0x10] sm:$0xff] }
 0x101   : > { %v952_v63 = vpop.xlane.xlu1 %951 }
 0x102   : > { %v942_v0 = vpop.xlane.xlu0 %941  ;;  %v1020_v47 = vadd.f32 %v952_v63, %v860_v59 }
 0x103   : > { %v1018_v46 = vadd.f32 %v942_v0, %v858_v43 }
 0x104   : > { %1037 = vst.msk [vmem:[#allocation3 + $0x10] sm:$0xff] %vm1034_vm1, %v1020_v47 }
 0x105   : > { %1035 = vst.msk [vmem:[#allocation3] sm:$0xff] %vm1034_vm1, %v1018_v46  ;;  %v957_v18 = vpop.xlane.xlu1 %956 }
 0x106   : > { %v1021_v9 = vadd.f32 %v957_v18, %v861_v56  ;;  %v316_v56 = vld [vmem:[#allocation2 + $0x18] sm:$0xff] }
 0x107   : > { %v947_v1 = vpop.xlane.xlu0 %946 }
 0x108   : > { %v1019_v3 = vadd.f32 %v947_v1, %v859_v35  ;;  %1038 = vst.msk [vmem:[#allocation3 + $0x18] sm:$0xff] %vm1034_vm1, %v1021_v9 }
 0x109   : > { %v967_v10 = vpop.xlane.xlu1 %966 }
 0x10a   : > { %1036 = vst.msk [vmem:[#allocation3 + $0x8] sm:$0xff] %vm1034_vm1, %v1019_v3  ;;  %v1023_v24 = vadd.f32 %v967_v10, %v863_v19  ;;  %v317_v10 = vld [vmem:[#allocation2 + $0x20] sm:$0xff] }
 0x10b   : > { %v962_v57 = vpop.xlane.xlu0 %961 }
 0x10c   : > { %v1022_v55 = vadd.f32 %v962_v57, %v862_v12  ;;  %1040 = vst.msk [vmem:[#allocation3 + $0x28] sm:$0xff] %vm1034_vm1, %v1023_v24 }
 0x10d   : > { %v977_v38 = vpop.xlane.xlu1 %976 }
 0x10e   : > { %1039 = vst.msk [vmem:[#allocation3 + $0x20] sm:$0xff] %vm1034_vm1, %v1022_v55  ;;  %v1025_v13 = vadd.f32 %v977_v38, %v865_v48 }
 0x10f   : > { %v972_v22 = vpop.xlane.xlu0 %971 }
 0x110   : > { %v1024_v62 = vadd.f32 %v972_v22, %v864_v36  ;;  %1042 = vst.msk [vmem:[#allocation3 + $0x38] sm:$0xff] %vm1034_vm1, %v1025_v13  ;;  %v318_v36 = vld [vmem:[#allocation2 + $0x28] sm:$0xff] }
 0x111   : > { %v987_v37 = vpop.xlane.xlu1 %986 }
 0x112   : > { %1041 = vst.msk [vmem:[#allocation3 + $0x30] sm:$0xff] %vm1034_vm1, %v1024_v62  ;;  %v1027_v58 = vadd.f32 %v987_v37, %v867_v30 }
 0x113   : > { %v982_v17 = vpop.xlane.xlu0 %981 }
 0x114   : > { %v1026_v25 = vadd.f32 %v982_v17, %v866_v44  ;;  %1044 = vst.msk [vmem:[#allocation3 + $0x48] sm:$0xff] %vm1034_vm1, %v1027_v58  ;;  %v319_v17 = vld [vmem:[#allocation2 + $0x30] sm:$0xff] }
 0x115   : > { %v997_v26 = vpop.xlane.xlu1 %996 }
 0x116   : > { %1043 = vst.msk [vmem:[#allocation3 + $0x40] sm:$0xff] %vm1034_vm1, %v1026_v25  ;;  %v1029_v39 = vadd.f32 %v997_v26, %v869_v51 }
 0x117   : > { %v992_v14 = vpop.xlane.xlu0 %991 }
 0x118   : > { %v1028_v6 = vadd.f32 %v992_v14, %v868_v54  ;;  %1046 = vst.msk [vmem:[#allocation3 + $0x58] sm:$0xff] %vm1034_vm1, %v1029_v39  ;;  %v320_v39 = vld [vmem:[#allocation2 + $0x38] sm:$0xff] }
 0x119   : > { %v1007_v49 = vpop.xlane.xlu1 %1006 }
 0x11a   : > { %1045 = vst.msk [vmem:[#allocation3 + $0x50] sm:$0xff] %vm1034_vm1, %v1028_v6  ;;  %v1031_v20 = vadd.f32 %v1007_v49, %v871_v29 }
 0x11b   : > { %v1002_v16 = vpop.xlane.xlu0 %1001 }
 0x11c   : > { %v1030_v15 = vadd.f32 %v1002_v16, %v870_v7  ;;  %1048 = vst.msk [vmem:[#allocation3 + $0x68] sm:$0xff] %vm1034_vm1, %v1031_v20 }
 0x11e   : > { %1047 = vst.msk [vmem:[#allocation3 + $0x60] sm:$0xff] %vm1034_vm1, %v1030_v15  ;;  %v321_v15 = vld [vmem:[#allocation2 + $0x40] sm:$0xff] }
 0x122   : > { %v1017_v33 = vpop.xlane.xlu1 %1016 }
 0x123   : > { %v1033_v60 = vadd.f32 %v1017_v33, %v873_v40 }
 0x125   : > { %1050 = vst.msk [vmem:[#allocation3 + $0x78] sm:$0xff] %vm1034_vm1, %v1033_v60 }
 0x12a   : > { %v1012_v52 = vpop.xlane.xlu0 %1011 }
 0x12b   : > { %v1032_v32 = vadd.f32 %v1012_v52, %v872_v50 }
 0x12d   : > { %1049 = vst.msk [vmem:[#allocation3 + $0x70] sm:$0xff] %vm1034_vm1, %v1032_v32 }
 0x162   : > { %v395_v42 = vpop.f32.mrb[0].mxu0 }
 0x163   : > { %v540_v61 = vpop.f32.mrb[0].mxu1  ;;  %v397_v34 = vpop.f32.mrb[1].mxu0 }
 0x164   : > { %v541_v31 = vadd.f32 %v540_v61, %v395_v42  ;;  %v542_v2 = vpop.f32.mrb[1].mxu1  ;;  %v322_v42 = vld [vmem:[#allocation2 + $0x48] sm:$0xff] }
 0x166   : > { %v619_v21 = vadd.f32 %v541_v31, %v313_v4  ;;  %v400_v8 = vpop.f32.mrb[2].mxu0 }
 0x167   : > { %v545_v45 = vpop.f32.mrb[2].mxu1  ;;  %v402_v5 = vpop.f32.mrb[3].mxu0 }
 0x168   : > { %635 = vst [vmem:[#allocation2] sm:$0xff] %v619_v21  ;;  %v546_v11 = vadd.f32 %v545_v45, %v400_v8  ;;  %v547_v23 = vpop.f32.mrb[3].mxu1  ;;  %v323_v8 = vld [vmem:[#allocation2 + $0x50] sm:$0xff] }
 0x16a   : > { %v620_v41 = vadd.f32 %v546_v11, %v314_v28  ;;  %v405_v53 = vpop.f32.mrb[4].mxu0 }
 0x16b   : > { %v550_v59 = vpop.f32.mrb[4].mxu1  ;;  %v407_v63 = vpop.f32.mrb[5].mxu0 }
 0x16c   : > { %636 = vst [vmem:[#allocation2 + $0x8] sm:$0xff] %v620_v41  ;;  %v551_v43 = vadd.f32 %v550_v59, %v405_v53  ;;  %v552_v0 = vpop.f32.mrb[5].mxu1  ;;  %v324_v53 = vld [vmem:[#allocation2 + $0x58] sm:$0xff] }
 0x16e   : > { %v621_v47 = vadd.f32 %v551_v43, %v315_v27  ;;  %v410_v46 = vpop.f32.mrb[6].mxu0 }
 0x16f   : > { %v555_v18 = vpop.f32.mrb[6].mxu1  ;;  %v412_v35 = vpop.f32.mrb[7].mxu0 }
 0x170   : > { %637 = vst [vmem:[#allocation2 + $0x10] sm:$0xff] %v621_v47  ;;  %v556_v1 = vadd.f32 %v555_v18, %v410_v46  ;;  %v557_v9 = vpop.f32.mrb[7].mxu1  ;;  %v325_v46 = vld [vmem:[#allocation2 + $0x60] sm:$0xff] }
 0x172   : > { %v622_v3 = vadd.f32 %v556_v1, %v316_v56  ;;  %v415_v19 = vpop.f32.mrb[8].mxu0 }
 0x173   : > { %v560_v12 = vpop.f32.mrb[8].mxu1  ;;  %v417_v57 = vpop.f32.mrb[9].mxu0 }
 0x174   : > { %638 = vst [vmem:[#allocation2 + $0x18] sm:$0xff] %v622_v3  ;;  %v561_v24 = vadd.f32 %v560_v12, %v415_v19  ;;  %v562_v55 = vpop.f32.mrb[9].mxu1  ;;  %v326_v19 = vld [vmem:[#allocation2 + $0x68] sm:$0xff] }
 0x176   : > { %v623_v48 = vadd.f32 %v561_v24, %v317_v10  ;;  %v420_v38 = vpop.f32.mrb[10].mxu0 }
 0x177   : > { %v565_v22 = vpop.f32.mrb[10].mxu1  ;;  %v422_v13 = vpop.f32.mrb[11].mxu0 }
 0x178   : > { %639 = vst [vmem:[#allocation2 + $0x20] sm:$0xff] %v623_v48  ;;  %v566_v62 = vadd.f32 %v565_v22, %v420_v38  ;;  %v567_v30 = vpop.f32.mrb[11].mxu1  ;;  %v327_v38 = vld [vmem:[#allocation2 + $0x70] sm:$0xff] }
 0x17a   : > { %v624_v37 = vadd.f32 %v566_v62, %v318_v36  ;;  %v425_v44 = vpop.f32.mrb[12].mxu0 }
 0x17b   : > { %v570_v58 = vpop.f32.mrb[12].mxu1  ;;  %v427_v25 = vpop.f32.mrb[13].mxu0 }
 0x17c   : > { %640 = vst [vmem:[#allocation2 + $0x28] sm:$0xff] %v624_v37  ;;  %v571_v51 = vadd.f32 %v570_v58, %v425_v44  ;;  %v572_v26 = vpop.f32.mrb[13].mxu1  ;;  %v328_v44 = vld [vmem:[#allocation2 + $0x78] sm:$0xff] }
 0x17e   : > { %v625_v54 = vadd.f32 %v571_v51, %v319_v17  ;;  %v430_v14 = vpop.f32.mrb[14].mxu0 }
 0x17f   : > { %v575_v6 = vpop.f32.mrb[14].mxu1  ;;  %v432_v29 = vpop.f32.mrb[15].mxu0 }
 0x180   : > { %641 = vst [vmem:[#allocation2 + $0x30] sm:$0xff] %v625_v54  ;;  %v576_v49 = vadd.f32 %v575_v6, %v430_v14  ;;  %v577_v7 = vpop.f32.mrb[15].mxu1  ;;  %v715_v14 = vld [vmem:[#allocation4] sm:$0x1] }
 0x182   : > { %v626_v20 = vadd.f32 %v576_v49, %v320_v39  ;;  %v435_v16 = vpop.f32.mrb[16].mxu0 }
 0x183   : > { %v580_v40 = vpop.f32.mrb[16].mxu1  ;;  %v437_v33 = vpop.f32.mrb[17].mxu0 }
 0x184   : > { %642 = vst [vmem:[#allocation2 + $0x38] sm:$0xff] %v626_v20  ;;  %v581_v60 = vadd.f32 %v580_v40, %v435_v16  ;;  %v582_v50 = vpop.f32.mrb[17].mxu1  ;;  %v1073_v20 = vld [vmem:[#allocation3 + $0x10] sm:$0xff] (!%p1511_p7)  ;;  %v1071_v16 = vld [vmem:[#allocation3] sm:$0xff] (!%p1511_p7)  ;;  %v1074_v40 = vld [vmem:[#allocation3 + $0x18] sm:$0xff] (!%p1511_p7) }
 0x185   : > { %v1072_v33 = vld [vmem:[#allocation3 + $0x8] sm:$0xff] (!%p1511_p7)  ;;  %v1075_v50 = vld [vmem:[#allocation3 + $0x20] sm:$0xff] (!%p1511_p7) }
 0x186   : > { %v627_v52 = vadd.f32 %v581_v60, %v321_v15  ;;  %v440_v32 = vpop.f32.mrb[18].mxu0  ;;  %v1867_v15 = vmov (!%p1511_p7), 0   ;;  %v1076_v60 = vld [vmem:[#allocation3 + $0x28] sm:$0xff] (!%p1511_p7) }
 0x187   : > { %v585_v4 = vpop.f32.mrb[18].mxu1  ;;  %v442_v61 = vpop.f32.mrb[19].mxu0  ;;  %1716 = vset.pattern.permute.xlu1 (!%p1511_p7), %v1867_v15  ;;  %1715 = vset.pattern.permute.xlu0 (!%p1511_p7), %v1867_v15 }
 0x188   : > { %643 = vst [vmem:[#allocation2 + $0x40] sm:$0xff] %v627_v52  ;;  %v586_v34 = vadd.f32 %v585_v4, %v440_v32  ;;  %v587_v31 = vpop.f32.mrb[19].mxu1  ;;  %1115 = vperm.xlu1 (!%p1511_p7), %1716, %v1073_v20   ;;  %1105 = vperm.xlu0 (!%p1511_p7), %1715, %v1071_v16   ;;  %v1078_v52 = vld [vmem:[#allocation3 + $0x38] sm:$0xff] (!%p1511_p7)  ;;  %v1077_v32 = vld [vmem:[#allocation3 + $0x30] sm:$0xff] (!%p1511_p7)  ;;  %v1079_v4 = vld [vmem:[#allocation3 + $0x40] sm:$0xff] (!%p1511_p7) }
 0x189   : > { %v1082_v61 = vld [vmem:[#allocation3 + $0x58] sm:$0xff] (!%p1511_p7)  ;;  %v1084_v31 = vld [vmem:[#allocation3 + $0x68] sm:$0xff] (!%p1511_p7) }
 0x18a   : > { %v628_v2 = vadd.f32 %v586_v34, %v322_v42  ;;  %v445_v21 = vpop.f32.mrb[20].mxu0  ;;  %v1080_v42 = vld [vmem:[#allocation3 + $0x48] sm:$0xff] (!%p1511_p7)  ;;  %v1081_v34 = vld [vmem:[#allocation3 + $0x50] sm:$0xff] (!%p1511_p7) }
 0x18b   : > { %v590_v28 = vpop.f32.mrb[20].mxu1  ;;  %v447_v45 = vpop.f32.mrb[21].mxu0 }
 0x18c   : > { %644 = vst [vmem:[#allocation2 + $0x48] sm:$0xff] %v628_v2  ;;  %v591_v5 = vadd.f32 %v590_v28, %v445_v21  ;;  %v592_v11 = vpop.f32.mrb[21].mxu1  ;;  %1120 = vperm.xlu1 (!%p1511_p7), %1716, %v1074_v40   ;;  %1110 = vperm.xlu0 (!%p1511_p7), %1715, %v1072_v33   ;;  %v1083_v2 = vld [vmem:[#allocation3 + $0x60] sm:$0xff] (!%p1511_p7)  ;;  %v1086_v21 = vld [vmem:[#allocation3 + $0x78] sm:$0xff] (!%p1511_p7)  ;;  %v1057_v28 = vld [vmem:[#allocation2 + $0x10] sm:$0xff] (!%p1511_p7) }
 0x18d   : > { %v1055_v45 = vld [vmem:[#allocation2] sm:$0xff] (!%p1511_p7) }
 0x18e   : > { %v629_v23 = vadd.f32 %v591_v5, %v323_v8  ;;  %v450_v41 = vpop.f32.mrb[22].mxu0  ;;  %v1085_v8 = vld [vmem:[#allocation3 + $0x70] sm:$0xff] (!%p1511_p7)  ;;  %v1089_v5 = vmul.f32 (!%p1511_p7), 2.0, %v1057_v28  ;;  %v1087_v11 = vmul.f32 (!%p1511_p7), 2.0, %v1055_v45 }
 0x18f   : > { %v595_v27 = vpop.f32.mrb[22].mxu1  ;;  %v452_v59 = vpop.f32.mrb[23].mxu0 }
 0x190   : > { %645 = vst [vmem:[#allocation2 + $0x50] sm:$0xff] %v629_v23  ;;  %v596_v63 = vadd.f32 %v595_v27, %v450_v41  ;;  %v597_v43 = vpop.f32.mrb[23].mxu1  ;;  %1130 = vperm.xlu1 (!%p1511_p7), %1716, %v1076_v60   ;;  %1125 = vperm.xlu0 (!%p1511_p7), %1715, %v1075_v50   ;;  %v1058_v23 = vld [vmem:[#allocation2 + $0x18] sm:$0xff] (!%p1511_p7)  ;;  %v1056_v41 = vld [vmem:[#allocation2 + $0x8] sm:$0xff] (!%p1511_p7) }
 0x192   : > { %v630_v0 = vadd.f32 %v596_v63, %v324_v53  ;;  %v455_v47 = vpop.f32.mrb[24].mxu0 }
 0x193   : > { %v600_v56 = vpop.f32.mrb[24].mxu1  ;;  %v457_v18 = vpop.f32.mrb[25].mxu0 }
 0x194   : > { %646 = vst [vmem:[#allocation2 + $0x58] sm:$0xff] %v630_v0  ;;  %v601_v35 = vadd.f32 %v600_v56, %v455_v47  ;;  %v602_v1 = vpop.f32.mrb[25].mxu1  ;;  %1140 = vperm.xlu1 (!%p1511_p7), %1716, %v1078_v52   ;;  %1135 = vperm.xlu0 (!%p1511_p7), %1715, %v1077_v32   ;;  %v1090_v0 = vmul.f32 (!%p1511_p7), 2.0, %v1058_v23  ;;  %v1088_v47 = vmul.f32 (!%p1511_p7), 2.0, %v1056_v41  ;;  %v1060_v18 = vld [vmem:[#allocation2 + $0x28] sm:$0xff] (!%p1511_p7) }
 0x196   : > { %v631_v9 = vadd.f32 %v601_v35, %v325_v46  ;;  %v460_v3 = vpop.f32.mrb[26].mxu0  ;;  %v1059_v35 = vld [vmem:[#allocation2 + $0x20] sm:$0xff] (!%p1511_p7) }
 0x197   : > { %v605_v10 = vpop.f32.mrb[26].mxu1  ;;  %v462_v12 = vpop.f32.mrb[27].mxu0 }
 0x198   : > { %647 = vst [vmem:[#allocation2 + $0x60] sm:$0xff] %v631_v9  ;;  %v606_v57 = vadd.f32 %v605_v10, %v460_v3  ;;  %v607_v24 = vpop.f32.mrb[27].mxu1  ;;  %1150 = vperm.xlu1 (!%p1511_p7), %1716, %v1080_v42   ;;  %1145 = vperm.xlu0 (!%p1511_p7), %1715, %v1079_v4   ;;  %v1286_v9 = vlaneseq (!%p1511_p7) }
 0x199   : > { %v1062_v24 = vld [vmem:[#allocation2 + $0x38] sm:$0xff] (!%p1511_p7) }
 0x19a   : > { %v632_v55 = vadd.f32 %v606_v57, %v326_v19  ;;  %v465_v48 = vpop.f32.mrb[28].mxu0 }
 0x19b   : > { %v610_v36 = vpop.f32.mrb[28].mxu1  ;;  %v467_v22 = vpop.f32.mrb[29].mxu0  ;;  %v1066_v42 = vld [vmem:[#allocation2 + $0x58] sm:$0xff] (!%p1511_p7) }
 0x19c   : > { %648 = vst [vmem:[#allocation2 + $0x68] sm:$0xff] %v632_v55  ;;  %v611_v13 = vadd.f32 %v610_v36, %v465_v48  ;;  %v612_v62 = vpop.f32.mrb[29].mxu1  ;;  %1160 = vperm.xlu1 (!%p1511_p7), %1716, %v1082_v61   ;;  %1155 = vperm.xlu0 (!%p1511_p7), %1715, %v1081_v34   ;;  %v1092_v55 = vmul.f32 (!%p1511_p7), 2.0, %v1060_v18  ;;  %v1091_v48 = vmul.f32 (!%p1511_p7), 2.0, %v1059_v35 }
 0x19e   : > { %v633_v30 = vadd.f32 %v611_v13, %v327_v38  ;;  %v470_v37 = vpop.f32.mrb[30].mxu0  ;;  %v1061_v38 = vld [vmem:[#allocation2 + $0x30] sm:$0xff] (!%p1511_p7) }
 0x19f   : > { %v615_v17 = vpop.f32.mrb[30].mxu1  ;;  %v472_v58 = vpop.f32.mrb[31].mxu0 }
 0x1a0   : > { %649 = vst [vmem:[#allocation2 + $0x70] sm:$0xff] %v633_v30  ;;  %v616_v25 = vadd.f32 %v615_v17, %v470_v37  ;;  %v617_v51 = vpop.f32.mrb[31].mxu1  ;;  %1170 = vperm.xlu1 (!%p1511_p7), %1716, %v1084_v31   ;;  %1165 = vperm.xlu0 (!%p1511_p7), %1715, %v1083_v2   ;;  %v2732_v58 = vshrl.u32 (!%p1511_p7), %v1286_v9, 7 }
 0x1a1   : > { %v1093_v51 = vmul.f32 (!%p1511_p7), 2.0, %v1061_v38 }
 0x1a2   : > { %v634_v26 = vadd.f32 %v616_v25, %v328_v44  ;;  %v782_v54 = vpop.f32.mrb[32].mxu0  ;;  %1054 = sbr.rel (%p1511_p7) target bundleno = 594 (0x252), region = 36  ;;  %v1094_v44 = vmul.f32 (!%p1511_p7), 2.0, %v1062_v24  ;;  %vm1338_vm2 = vcmp.lt.s32.totalorder (!%p1511_p7), %v2732_v58, 4  ;;  %vm1322_vm3 = vcmp.lt.s32.totalorder (!%p1511_p7), %v2732_v58, 2 }
 0x1a3   : > { %v852_v39 = vpop.f32.mrb[32].mxu1  ;;  %v784_v6 = vpop.f32.mrb[33].mxu0 }
 0x1a4   : > { %650 = vst [vmem:[#allocation2 + $0x78] sm:$0xff] %v634_v26  ;;  %v853_v29 = vadd.f32 %v852_v39, %v782_v54  ;;  %v854_v49 = vpop.f32.mrb[33].mxu1  ;;  %1180 = vperm.xlu1 (!%p1511_p7), %1716, %v1086_v21   ;;  %1175 = vperm.xlu0 (!%p1511_p7), %1715, %v1085_v8   ;;  %v1064_v26 = vld [vmem:[#allocation2 + $0x48] sm:$0xff] (!%p1511_p7)  ;;  %v1063_v54 = vld [vmem:[#allocation2 + $0x40] sm:$0xff] (!%p1511_p7)  ;;  %v1065_v21 = vld [vmem:[#allocation2 + $0x50] sm:$0xff] (!%p1511_p7) }
 0x1a5   : > { %v1096_v33 = vmul.f32 (!%p1511_p7), 2.0, %v1064_v26  ;;  %v1095_v60 = vmul.f32 (!%p1511_p7), 2.0, %v1063_v54 }
 0x1a6   : > { %v856_v7 = vadd.f32 %v853_v29, %v715_v14 }
 0x1a8   : > { %857 = vst [vmem:[#allocation4] sm:$0x1] %v856_v7 }
 0x1af   : > { %v2725_v53 = vld [vmem:[#allocation4] ss:$0 sm:$0xff] }
 0x207   : > { %v1116_v27 = vpop.permute.xlu1 %1115  ;;  %v1106_v59 = vpop.permute.xlu0 %1105 }
 0x208   : > { %v1185_v63 = vsub.f32 %v1116_v27, %v1089_v5  ;;  %v1183_v43 = vsub.f32 %v1106_v59, %v1087_v11  ;;  %v1098_v11 = vmul.f32 2.0, %v1066_v42 }
 0x20a   : > { %v1208_v46 = vadd.f32 %v2725_v53, %v1185_v63  ;;  %v1206_v56 = vadd.f32 %v2725_v53, %v1183_v43  ;;  %v1068_v63 = vld [vmem:[#allocation2 + $0x68] sm:$0xff]  ;;  %v1067_v43 = vld [vmem:[#allocation2 + $0x60] sm:$0xff] }
 0x20b   : > { %v1121_v1 = vpop.permute.xlu1 %1120  ;;  %v1111_v3 = vpop.permute.xlu0 %1110  ;;  %v1099_v24 = vmul.f32 2.0, %v1067_v43 }
 0x20c   : > { %v1224_v19 = vmax.f32 %v1208_v46, 0.0  ;;  %v1222_v10 = vmax.f32 %v1206_v56, 0.0  ;;  %v1186_v12 = vsub.f32 %v1121_v1, %v1090_v0  ;;  %v1184_v57 = vsub.f32 %v1111_v3, %v1088_v47 }
 0x20d   : > { %v1097_v46 = vmul.f32 2.0, %v1065_v21  ;;  %v1868_v3 = vmov 0.0  }
 0x20e   : > { %v1240_v36 = vmul.f32 -0.5, %v1224_v19  ;;  %v1238_v22 = vmul.f32 -0.5, %v1222_v10  ;;  %v1209_v13 = vadd.f32 %v2725_v53, %v1186_v12  ;;  %v1207_v62 = vadd.f32 %v2725_v53, %v1184_v57 }
 0x20f   : > { %v1131_v30 = vpop.permute.xlu1 %1130  ;;  %v1126_v37 = vpop.permute.xlu0 %1125  ;;  %v1354_v19 = vsel %vm1338_vm2, -1.0, %v1868_v3  ;;  %v1100_v57 = vmul.f32 2.0, %v1068_v63 }
 0x210   : > { %v1225_v17 = vmax.f32 %v1209_v13, 0.0  ;;  %v1223_v25 = vmax.f32 %v1207_v62, 0.0  ;;  %v1254_v14 = vmul.f32 1.442695, %v1238_v22  ;;  %v1188_v39 = vsub.f32 %v1131_v30, %v1092_v55  ;;  %v1070_v55 = vld [vmem:[#allocation2 + $0x78] sm:$0xff]  ;;  %v1069_v30 = vld [vmem:[#allocation2 + $0x70] sm:$0xff] }
 0x211   : > { %v1187_v6 = vsub.f32 %v1126_v37, %v1091_v48  ;;  %v1258_v29 = vmul.f32 1.442695, %v1240_v36  ;;  %v1370_v37 = vsel %vm1322_vm3, 1.0, %v1354_v19 }
 0x212   : > { %v1241_v49 = vmul.f32 -0.5, %v1225_v17  ;;  %v1239_v7 = vmul.f32 -0.5, %v1223_v25  ;;  %v1211_v20 = vadd.f32 %v2725_v53, %v1188_v39  ;;  %1717 = vpow2.f32 %v1254_v14 }
 0x213   : > { %v1210_v16 = vadd.f32 %v2725_v53, %v1187_v6  ;;  %v1141_v15 = vpop.permute.xlu1 %1140  ;;  %v1136_v40 = vpop.permute.xlu0 %1135  ;;  %1719 = vpow2.f32 %v1258_v29  ;;  %v1102_v17 = vmul.f32 2.0, %v1070_v55 }
 0x214   : > { %v1256_v50 = vmul.f32 1.442695, %v1239_v7  ;;  %v1190_v52 = vsub.f32 %v1141_v15, %v1094_v44  ;;  %v1189_v32 = vsub.f32 %v1136_v40, %v1093_v51  ;;  %v1260_v4 = vmul.f32 1.442695, %v1241_v49 }
 0x215   : > { %v1227_v61 = vmax.f32 %v1211_v20, 0.0  ;;  %v1226_v34 = vmax.f32 %v1210_v16, 0.0  ;;  %v1101_v7 = vmul.f32 2.0, %v1069_v30 }
 0x216   : > { %v1213_v31 = vadd.f32 %v2725_v53, %v1190_v52  ;;  %v1212_v2 = vadd.f32 %v2725_v53, %v1189_v32  ;;  %1721 = vpow2.f32 %v1256_v50 }
 0x217   : > { %v1243_v8 = vmul.f32 -0.5, %v1227_v61  ;;  %v1242_v28 = vmul.f32 -0.5, %v1226_v34  ;;  %v1151_v45 = vpop.permute.xlu1 %1150  ;;  %v1146_v5 = vpop.permute.xlu0 %1145  ;;  %1723 = vpow2.f32 %v1260_v4 }
 0x218   : > { %v1229_v23 = vmax.f32 %v1213_v31, 0.0  ;;  %v1228_v41 = vmax.f32 %v1212_v2, 0.0  ;;  %v1192_v27 = vsub.f32 %v1151_v45, %v1096_v33  ;;  %v1191_v59 = vsub.f32 %v1146_v5, %v1095_v60 }
 0x219   : > { %v1264_v0 = vmul.f32 1.442695, %v1243_v8  ;;  %v1262_v47 = vmul.f32 1.442695, %v1242_v28 }
 0x21a   : > { %v1245_v56 = vmul.f32 -0.5, %v1229_v23  ;;  %v1244_v18 = vmul.f32 -0.5, %v1228_v41  ;;  %v1215_v35 = vadd.f32 %v2725_v53, %v1192_v27  ;;  %v1214_v1 = vadd.f32 %v2725_v53, %v1191_v59 }
 0x21b   : > { %v1161_v10 = vpop.permute.xlu1 %1160  ;;  %v1156_v12 = vpop.permute.xlu0 %1155  ;;  %1725 = vpow2.f32 %v1262_v47 }
 0x21c   : > { %v1268_v48 = vmul.f32 1.442695, %v1245_v56  ;;  %v1266_v38 = vmul.f32 1.442695, %v1244_v18  ;;  %v1231_v36 = vmax.f32 %v1215_v35, 0.0  ;;  %1727 = vpow2.f32 %v1264_v0  ;;  %v1718_v25 = vpop.eup %1717 }
 0x21d   : > { %v1230_v22 = vmax.f32 %v1214_v1, 0.0  ;;  %v1194_v13 = vsub.f32 %v1161_v10, %v1098_v11  ;;  %v1193_v62 = vsub.f32 %v1156_v12, %v1097_v46  ;;  %v1720_v6 = vpop.eup %1719  ;;  %v1390_v33 = vmul.f32 %v1718_v25, %v1370_v37 }
 0x21e   : > { %v1247_v44 = vmul.f32 -0.5, %v1231_v36  ;;  %1729 = vpow2.f32 %v1266_v38  ;;  %v1392_v42 = vmul.f32 0.0, %v1720_v6 }
 0x21f   : > { %v1246_v51 = vmul.f32 -0.5, %v1230_v22  ;;  %v1217_v26 = vadd.f32 %v2725_v53, %v1194_v13  ;;  %v1216_v54 = vadd.f32 %v2725_v53, %v1193_v62  ;;  %v1171_v14 = vpop.permute.xlu1 %1170  ;;  %v1166_v39 = vpop.permute.xlu0 %1165  ;;  %1731 = vpow2.f32 %v1268_v48 }
 0x220   : > { %v1196_v29 = vsub.f32 %v1171_v14, %v1100_v57  ;;  %v1195_v49 = vsub.f32 %v1166_v39, %v1099_v24  ;;  %v1722_v20 = vpop.eup %1721  ;;  %v1272_v16 = vmul.f32 1.442695, %v1247_v44 }
 0x221   : > { %v1270_v58 = vmul.f32 1.442695, %v1246_v51  ;;  %v1233_v15 = vmax.f32 %v1217_v26, 0.0  ;;  %v1232_v40 = vmax.f32 %v1216_v54, 0.0  ;;  %v1391_v60 = vmul.f32 0.0, %v1722_v20  ;;  %v1724_v32 = vpop.eup %1723 }
 0x222   : > { %v1219_v50 = vadd.f32 %v2725_v53, %v1196_v29  ;;  %v1218_v52 = vadd.f32 %v2725_v53, %v1195_v49  ;;  %v1393_v41 = vmul.f32 0.0, %v1724_v32 }
 0x223   : > { %1733 = vpow2.f32 %v1270_v58  ;;  %v1249_v4 = vmul.f32 -0.5, %v1233_v15  ;;  %v1248_v61 = vmul.f32 -0.5, %v1232_v40  ;;  %v1181_v34 = vpop.permute.xlu1 %1180  ;;  %v1176_v31 = vpop.permute.xlu0 %1175  ;;  %v1406_v2 = vadd.f32 %v1391_v60, %v1390_v33 }
 0x224   : > { %v1235_v21 = vmax.f32 %v1219_v50, 0.0  ;;  %v1234_v8 = vmax.f32 %v1218_v52, 0.0  ;;  %v1198_v28 = vsub.f32 %v1181_v34, %v1102_v17  ;;  %1735 = vpow2.f32 %v1272_v16 }
 0x225   : > { %v1276_v45 = vmul.f32 1.442695, %v1249_v4  ;;  %v1274_v5 = vmul.f32 1.442695, %v1248_v61  ;;  %v1197_v11 = vsub.f32 %v1176_v31, %v1101_v7  ;;  %v1726_v23 = vpop.eup %1725  ;;  %v1407_v27 = vadd.f32 %v1406_v2, %v1392_v42 }
 0x226   : > { %v1251_v59 = vmul.f32 -0.5, %v1235_v21  ;;  %v1250_v63 = vmul.f32 -0.5, %v1234_v8  ;;  %v1728_v43 = vpop.eup %1727  ;;  %v1221_v0 = vadd.f32 %v2725_v53, %v1198_v28  ;;  %v1394_v46 = vmul.f32 0.0, %v1726_v23 }
 0x227   : > { %v1220_v47 = vadd.f32 %v2725_v53, %v1197_v11  ;;  %v1408_v56 = vadd.f32 %v1407_v27, %v1393_v41  ;;  %1737 = vpow2.f32 %v1274_v5  ;;  %v1395_v57 = vmul.f32 0.0, %v1728_v43 }
 0x228   : > { %v1278_v18 = vmul.f32 1.442695, %v1250_v63  ;;  %v1730_v35 = vpop.eup %1729  ;;  %1739 = vpow2.f32 %v1276_v45  ;;  %v1280_v1 = vmul.f32 1.442695, %v1251_v59  ;;  %v1237_v19 = vmax.f32 %v1221_v0, 0.0 }
 0x229   : > { %v1236_v10 = vmax.f32 %v1220_v47, 0.0  ;;  %v1732_v12 = vpop.eup %1731  ;;  %v1409_v24 = vadd.f32 %v1408_v56, %v1394_v46  ;;  %v1396_v38 = vmul.f32 0.0, %v1730_v35  ;;  %v1321_v4 = vand.u32 127, %v1286_v9 }
 0x22a   : > { %1741 = vpow2.f32 %v1278_v18  ;;  %v1253_v55 = vmul.f32 -0.5, %v1237_v19  ;;  %v1397_v62 = vmul.f32 0.0, %v1732_v12 }
 0x22b   : > { %v1252_v48 = vmul.f32 -0.5, %v1236_v10  ;;  %v1410_v36 = vadd.f32 %v1409_v24, %v1395_v57  ;;  %1743 = vpow2.f32 %v1280_v1  ;;  %vm1387_vm4 = vcmp.lt.s32.totalorder %v1321_v4, 4 }
 0x22c   : > { %v1284_v53 = vmul.f32 1.442695, %v1253_v55  ;;  %vm1386_vm5 = vcmp.lt.s32.totalorder %v1321_v4, 2  ;;  %v1388_v2 = vsel %vm1387_vm4, -1.0, %v1868_v3 }
 0x22d   : > { %v1734_v22 = vpop.eup %1733  ;;  %v1282_v13 = vmul.f32 1.442695, %v1252_v48  ;;  %v1411_v30 = vadd.f32 %v1410_v36, %v1396_v38  ;;  %v1389_v28 = vsel %vm1386_vm5, 1.0, %v1388_v2 }
 0x22e   : > { %v1736_v37 = vpop.eup %1735  ;;  %v1398_v44 = vmul.f32 0.0, %v1734_v22 }
 0x22f   : > { %v1412_v17 = vadd.f32 %v1411_v30, %v1397_v62  ;;  %1745 = vpow2.f32 %v1282_v13  ;;  %v1399_v51 = vmul.f32 0.0, %v1736_v37 }
 0x230   : > { %1747 = vpow2.f32 %v1284_v53 }
 0x231   : > { %v1738_v25 = vpop.eup %1737  ;;  %v1413_v26 = vadd.f32 %v1412_v17, %v1398_v44 }
 0x232   : > { %v1740_v54 = vpop.eup %1739  ;;  %v1400_v14 = vmul.f32 0.0, %v1738_v25 }
 0x233   : > { %v1414_v39 = vadd.f32 %v1413_v26, %v1399_v51  ;;  %v1401_v29 = vmul.f32 0.0, %v1740_v54 }
 0x234   : > { %v1742_v6 = vpop.eup %1741 }
 0x235   : > { %v1415_v49 = vadd.f32 %v1414_v39, %v1400_v14  ;;  %v1744_v7 = vpop.eup %1743  ;;  %v1402_v20 = vmul.f32 0.0, %v1742_v6 }
 0x236   : > { %v1403_v15 = vmul.f32 0.0, %v1744_v7 }
 0x237   : > { %v1416_v16 = vadd.f32 %v1415_v49, %v1401_v29 }
 0x239   : > { %v1746_v58 = vpop.eup %1745  ;;  %v1417_v40 = vadd.f32 %v1416_v16, %v1402_v20 }
 0x23a   : > { %v1748_v33 = vpop.eup %1747  ;;  %v1404_v60 = vmul.f32 0.0, %v1746_v58 }
 0x23b   : > { %v1418_v50 = vadd.f32 %v1417_v40, %v1403_v15  ;;  %v1405_v52 = vmul.f32 0.0, %v1748_v33 }
 0x23d   : > { %v1419_v32 = vadd.f32 %v1418_v50, %v1404_v60 }
 0x23f   : > { %v1420_v42 = vadd.f32 %v1419_v32, %v1405_v52 }
 0x241   : > { %v1421_v61 = vrot.slane %v1420_v42, 4 }
 0x243   : > { %v1422_v34 = vadd.f32 %v1421_v61, %v1420_v42 }
 0x245   : > { %v1423_v31 = vrot.slane %v1422_v34, 2 }
 0x247   : > { %v1424_v21 = vadd.f32 %v1423_v31, %v1422_v34 }
 0x249   : > { %v1425_v8 = vrot.slane %v1424_v21, 1 }
 0x24b   : > { %v1426_v45 = vadd.f32 %v1425_v8, %v1424_v21 }
 0x24d   : > { %v1427_v5 = vmul.f32 %v1426_v45, %v1389_v28 }
 0x24f   : > { %v1428_v11 = vmul.f32 0.25, %v1427_v5 }
 0x251   : > { %1429 = vst [vmem:[#allocation8] sm:$0x1] %v1428_v11 }
 0x252 PF: > { %p2757_p9 = scmp.eq.s32.totalorder %s1502_s12, 1  ;;  %s1869_s17 = smov [#allocation8]  }
 0x253   : > { %s1439_s24 = sshll.u32 %s1869_s17, 4  ;;  %s1440_s24 = int_to_ptr.vmem [resolvable:$true] %s1439_s24 }
 0x254   : > { %s1779_s26 = scalar_lea.vmem %s1440_s24, 16  ;;  %s1785_s27 = scalar_lea.vmem %s1440_s24, 32 }
 0x255   : > { %p1780_p5 = scmp.ne.s32.totalorder %s1440_s24, %s1779_s26  ;;  %p1786_p11 = scmp.lt.s32.totalorder %s1440_s24, %s1440_s24 }
 0x256   : > { %p1787_p13 = scmp.lt.s32.totalorder %s1785_s27, %s1779_s26 }
 0x257   : > { %p1781_p6 = pnand %p1780_p5, %p2757_p9 }
 0x258   : > { %p1788_p1 = por %p1787_p13, %p1786_p11 }
 0x259   : > { %p1782_p8 = pneg %p1781_p6 }
 0x25b   : > { %p1789_p2 = pnand %p1788_p1, %p1782_p8 }
 0x25d   : > { %1792 = shalt.err (!%p1789_p2)
}
 0x25e   : > { %s1793_s30 = scalar_lea.hbm %s2802_s1, 16 }
 0x25f   : > { %p1794_p3 = scmp.ne.s32.totalorder %s2802_s1, %s1793_s30  ;;  %p1799_p4 = scmp.lt.u32.totalorder %s1793_s30, %s2802_s1 }
 0x261   : > { %p1795_p12 = pnand %p1794_p3, %p2757_p9 }
 0x263   : > { %p1796_p0 = pneg %p1795_p12 }
 0x265   : > { %p1801_p10 = pnand %p1799_p4, %p1796_p0 }
 0x267   : > { %1804 = shalt.err (!%p1801_p10)
}
 0x268   : > { %1649 = dma.vmem_to_hbm [thread:$0]  (%p2757_p9), %s1440_s24, 16, %s2802_s1, [#allocation7]  }
 0x269   : > { %1834 = dma.done.wait (%p2757_p9), [#allocation7], 16  }
 0x26a   : > { %1836 = vsyncadd (%p2757_p9), [#allocation7], 4294967280 }
 0x26b PF: > { %s15_s11 = sadd.s32 1, %s1859_s11   ;;  %s2997_s6 = smov %s1843_s7 }
 0x26c   : > { %p12_p7 = scmp.ge.s32.totalorder %s15_s11, 4   ;;  %s2998_s7 = smov %s1847_s8 }
 0x26d   : > { %s2999_s8 = smov %s1931_s18  ;;  %s3000_s9 = smov %s1855_s10 }
 0x26e   : > { %s3001_s10 = smov %s3003_s13  ;;  %14 = sbr.rel (!%p12_p7) target bundleno = 5 (0x5), region = 71 }
 0x275   :  { %1452 = vsyncpa [#allocation6], 1 }
 0x276   :  { %1454 = vsyncpa [#allocation6 + $0x1], 1 }
 0x277   :  { %1455 = vsyncpa [#allocation7], 1 }
 0x278   :  { %1457 = vsyncpa [#allocation7 + $0x1], 1 }

</bundles_post_ra>
